<compile_context>
chip_gen: v5e
topology: v5e:2x2
jax: 0.10.0
libtpu: 0.0.40
codegen_flags: <defaults>
</compile_context>

<pallas_src>
import functools
import math

import numpy as np
import jax
import jax.numpy as jnp
from jax.experimental import pallas as pl
from jax.experimental.pallas import tpu as pltpu


# ------------------------------------------------------------------ utilities

def sinusoid_table(n_pos, d_hid):
    """Same recipe as PositionalEncoding._get_sinusoid_encoding_table."""
    pos = np.arange(n_pos, dtype=np.float64)[:, None]
    j = np.arange(d_hid, dtype=np.float64)[None, :]
    angle = pos / np.power(10000.0, 2.0 * np.floor(j / 2.0) / d_hid)
    table = np.zeros((n_pos, d_hid), dtype=np.float64)
    table[:, 0::2] = np.sin(angle[:, 0::2])
    table[:, 1::2] = np.cos(angle[:, 1::2])
    return jnp.asarray(table, dtype=jnp.float32)


def _layernorm(x, g, b, eps=1e-5):
    mu = jnp.mean(x, axis=-1, keepdims=True)
    var = jnp.mean((x - mu) ** 2, axis=-1, keepdims=True)
    return (x - mu) * jax.lax.rsqrt(var + eps) * g + b


# ------------------------------------------------------------------ fused kernel

def fused_encoder_kernel(x_ref, pos_ref, t_ref,
                         wqkv_ref, bqkv_ref, wo_ref, bo_ref,
                         g1_ref, be1_ref, w1_ref, b1_ref,
                         w2_ref, b2_ref, g2_ref, be2_ref,
                         o_ref, *, n_head, n_batch):
    """One grid step == one encoder layer; activation carried in o_ref (VMEM-resident)."""
    layer = pl.program_id(0)

    # Layer 0: enc_input = x + positional encoding (pos pre-tiled over batch).
    @pl.when(layer == 0)
    def _():
        o_ref[...] = x_ref[...] + pos_ref[...]

    bs, d_model = o_ref.shape           # (B*S, D)
    seq = bs // n_batch
    dk = d_model // n_head

    # Additive time conditioning (t pre-broadcast to (B*S, D)).
    h = o_ref[...] + t_ref[...]

    # ---- fused Q/K/V projection (attention scale folded into wq/bq) ----
    qkv = jnp.dot(h, wqkv_ref[0], preferred_element_type=jnp.float32) + bqkv_ref[0]
    q = qkv[:, :d_model]
    k = qkv[:, d_model:2 * d_model]
    v = qkv[:, 2 * d_model:]

    # ---- multi-head self-attention (enc_mask is None) ----
    ctx_rows = []
    for b in range(n_batch):            # static, tiny
        r0 = b * seq
        qb = q[r0:r0 + seq]             # (S, D)
        kb = k[r0:r0 + seq]
        vb = v[r0:r0 + seq]
        heads = []
        for hd in range(n_head):        # static, tiny
            c0 = hd * dk
            qh = qb[:, c0:c0 + dk]      # (S, dk)
            kh = kb[:, c0:c0 + dk]
            vh = vb[:, c0:c0 + dk]
            # q @ k^T without an explicit transpose (contract on last dims).
            s = jax.lax.dot_general(qh, kh, (((1,), (1,)), ((), ())),
                                    preferred_element_type=jnp.float32)   # (S, S)
            s = s - jnp.max(s, axis=-1, keepdims=True)
            p = jnp.exp(s)
            p = p * pl.reciprocal(jnp.sum(p, axis=-1, keepdims=True), approx=False)
            heads.append(jnp.dot(p, vh, preferred_element_type=jnp.float32))
        ctx_rows.append(jnp.concatenate(heads, axis=-1))                  # (S, D)
    ctx = jnp.concatenate(ctx_rows, axis=0)                               # (B*S, D)

    # Single output projection over the whole batch.
    attn = jnp.dot(ctx, wo_ref[0], preferred_element_type=jnp.float32) + bo_ref[0]
    r1 = _layernorm(h + attn, g1_ref[0], be1_ref[0])

    # ---- position-wise feed-forward ----
    ff = jnp.dot(r1, w1_ref[0], preferred_element_type=jnp.float32) + b1_ref[0]
    ff = jnp.maximum(ff, 0.0)
    ff = jnp.dot(ff, w2_ref[0], preferred_element_type=jnp.float32) + b2_ref[0]
    r2 = _layernorm(r1 + ff, g2_ref[0], be2_ref[0])

    o_ref[...] = r2.astype(o_ref.dtype)


# ------------------------------------------------------------------ wrapper

_STACKED_NAMES = ('wqkv', 'bqkv', 'wo', 'bo', 'g1', 'be1',
                  'w1', 'b1', 'w2', 'b2', 'g2', 'be2')


def prep_params(params, n_head):
    """Stack per-layer params as (L, ...) arrays; fuse QKV and fold 1/sqrt(dk) into wq/bq."""
    d_model = params['layers'][0]['wq'].shape[0]
    dk = d_model // n_head
    scale = 1.0 / math.sqrt(dk)

    def stack(fn):
        return jnp.stack([fn(lp) for lp in params['layers']], axis=0)

    stacked = dict(
        wqkv=stack(lambda lp: jnp.concatenate(
            [lp['wq'] * scale, lp['wk'], lp['wv']], axis=1)),      # (L, D, 3D)
        bqkv=stack(lambda lp: jnp.concatenate(
            [lp['bq'] * scale, lp['bk'], lp['bv']], axis=1)),      # (L, 1, 3D)
        wo=stack(lambda lp: lp['wo']), bo=stack(lambda lp: lp['bo']),
        g1=stack(lambda lp: lp['g1']), be1=stack(lambda lp: lp['be1']),
        w1=stack(lambda lp: lp['w1']), b1=stack(lambda lp: lp['b1']),
        w2=stack(lambda lp: lp['w2']), b2=stack(lambda lp: lp['b2']),
        g2=stack(lambda lp: lp['g2']), be2=stack(lambda lp: lp['be2']),
    )
    return dict(pos_table=params['pos_table'], stacked=stacked)


def transformer_encoder_forward(x, t, prepped, *, n_head):
    """x: (B, S, D), t: (B, D).  dropout is eval-mode identity."""
    B, S, D = x.shape
    sp = prepped['stacked']
    L = sp['wqkv'].shape[0]

    # Flatten batch*seq so projection/FFN matmuls use 16 sublanes; tiny prep ops
    # fuse into the surrounding XLA program.
    x2 = x.reshape(B * S, D)
    pos2 = jnp.tile(prepped['pos_table'][:S], (B, 1))                       # (B*S, D)
    t2 = jnp.broadcast_to(t[:, None, :], (B, S, D)).reshape(B * S, D)       # (B*S, D)

    def full2d(a):
        return pl.BlockSpec(a.shape, lambda l: (0, 0))

    def per_layer(a):
        return pl.BlockSpec((1,) + a.shape[1:], lambda l: (l, 0, 0))

    weights = [sp[n] for n in _STACKED_NAMES]
    in_specs = [full2d(x2), full2d(pos2), full2d(t2)] + [per_layer(w) for w in weights]

    out2 = pl.pallas_call(
        functools.partial(fused_encoder_kernel, n_head=n_head, n_batch=B),
        out_shape=jax.ShapeDtypeStruct((B * S, D), x.dtype),
        grid=(L,),
        in_specs=in_specs,
        # Constant index_map -> output block stays resident in VMEM across all
        # layers (carries the activation); single HBM writeback at grid end.
        out_specs=pl.BlockSpec((B * S, D), lambda l: (0, 0)),
        compiler_params=pltpu.CompilerParams(dimension_semantics=("arbitrary",)),
    )(x2, pos2, t2, *weights)

    return out2.reshape(B, S, D)


# ------------------------------------------------------------------ pure-JAX reference

def ref_forward(x, t, params, n_head):
    B, S, D = x.shape
    enc = x + params['pos_table'][None, :S]
    dk = D // n_head
    for lp in params['layers']:
        h = enc + t[:, None, :]
        q = h @ lp['wq'] + lp['bq']
        k = h @ lp['wk'] + lp['bk']
        v = h @ lp['wv'] + lp['bv']
        q = q.reshape(B, S, n_head, dk).transpose(0, 2, 1, 3)
        k = k.reshape(B, S, n_head, dk).transpose(0, 2, 1, 3)
        v = v.reshape(B, S, n_head, dk).transpose(0, 2, 1, 3)
        s = jnp.einsum('bhqd,bhkd->bhqk', q, k) / math.sqrt(dk)
        p = jax.nn.softmax(s, axis=-1)
        a = jnp.einsum('bhqk,bhkd->bhqd', p, v).transpose(0, 2, 1, 3).reshape(B, S, D)
        a = a @ lp['wo'] + lp['bo']
        r1 = _layernorm(h + a, lp['g1'], lp['be1'])
        ff = jnp.maximum(r1 @ lp['w1'] + lp['b1'], 0.0) @ lp['w2'] + lp['b2']
        enc = _layernorm(r1 + ff, lp['g2'], lp['be2'])
    return enc


# ------------------------------------------------------------------ param init

def init_params(key, d_model, d_inner, n_layer, n_node):
    def linear(k, din, dout):
        k1, k2 = jax.random.split(k)
        w = jax.random.normal(k1, (din, dout), jnp.float32) * (1.0 / math.sqrt(din))
        b = jax.random.normal(k2, (1, dout), jnp.float32) * 0.02
        return w, b

    layers = []
    for _ in range(n_layer):
        key, *ks = jax.random.split(key, 7)
        wq, bq = linear(ks[0], d_model, d_model)
        wk, bk = linear(ks[1], d_model, d_model)
        wv, bv = linear(ks[2], d_model, d_model)
        wo, bo = linear(ks[3], d_model, d_model)
        w1, b1 = linear(ks[4], d_model, d_inner)
        w2, b2 = linear(ks[5], d_inner, d_model)
        layers.append(dict(
            wq=wq, bq=bq, wk=wk, bk=bk, wv=wv, bv=bv, wo=wo, bo=bo,
            g1=jnp.ones((1, d_model), jnp.float32), be1=jnp.zeros((1, d_model), jnp.float32),
            w1=w1, b1=b1, w2=w2, b2=b2,
            g2=jnp.ones((1, d_model), jnp.float32), be2=jnp.zeros((1, d_model), jnp.float32)))
    return dict(pos_table=sinusoid_table(n_node, d_model), layers=layers)


# ------------------------------------------------------------------ main

if __name__ == "__main__":
    # Module config (small): d_model=32, d_inner=64, n_layer=2, n_head=4,
    # dropout=0.0, codebook_dim=4, cluster_count=4 -> n_node=16
    d_model, d_inner, n_layer, n_head = 32, 64, 2, 4
    codebook_dim, cluster_count = 4, 4
    n_node = codebook_dim * cluster_count
    B, S = 2, 8

    key = jax.random.PRNGKey(0)
    k_x, k_t, k_p = jax.random.split(key, 3)
    x = jax.random.normal(k_x, (B, S, d_model), jnp.float32)
    t = jax.random.normal(k_t, (B, d_model), jnp.float32)
    params = init_params(k_p, d_model, d_inner, n_layer, n_node)

    prepped = prep_params(params, n_head)
    forward = jax.jit(transformer_encoder_forward, static_argnames=("n_head",))

    out = forward(x, t, prepped, n_head=n_head)
    out = jax.block_until_ready(out)

    ref = ref_forward(x, t, params, n_head)
    assert out.shape == (B, S, d_model)
    np.testing.assert_allclose(np.asarray(out), np.asarray(ref), rtol=1e-4, atol=1e-4)

    print("KERNEL_OK")
</pallas_src>

<mosaic_0001>
module attributes {stable_mosaic.version = 11 : i64} {
  func.func @fused_encoder_kernel(%arg0: i32, %arg1: memref<16x32xf32, #tpu.memory_space<vmem>>, %arg2: memref<16x32xf32, #tpu.memory_space<vmem>>, %arg3: memref<16x32xf32, #tpu.memory_space<vmem>>, %arg4: memref<1x32x96xf32, #tpu.memory_space<vmem>>, %arg5: memref<1x1x96xf32, #tpu.memory_space<vmem>>, %arg6: memref<1x32x32xf32, #tpu.memory_space<vmem>>, %arg7: memref<1x1x32xf32, #tpu.memory_space<vmem>>, %arg8: memref<1x1x32xf32, #tpu.memory_space<vmem>>, %arg9: memref<1x1x32xf32, #tpu.memory_space<vmem>>, %arg10: memref<1x32x64xf32, #tpu.memory_space<vmem>>, %arg11: memref<1x1x64xf32, #tpu.memory_space<vmem>>, %arg12: memref<1x64x32xf32, #tpu.memory_space<vmem>>, %arg13: memref<1x1x32xf32, #tpu.memory_space<vmem>>, %arg14: memref<1x1x32xf32, #tpu.memory_space<vmem>>, %arg15: memref<1x1x32xf32, #tpu.memory_space<vmem>>, %arg16: memref<16x32xf32, #tpu.memory_space<vmem>>) attributes {dimension_semantics = [#tpu.dimension_semantics<arbitrary>], iteration_bounds = array<i64: 2>, scalar_prefetch = 0 : i64, scratch_operands = 0 : i64, tpu.core_type = #tpu.core_type<tc>, window_params = [{pipeline_mode = #tpu.pipeline_mode<synchronous>, transform_indices = @transform_0, window_bounds = array<i64: 16, 32>}, {pipeline_mode = #tpu.pipeline_mode<synchronous>, transform_indices = @transform_1, window_bounds = array<i64: 16, 32>}, {pipeline_mode = #tpu.pipeline_mode<synchronous>, transform_indices = @transform_2, window_bounds = array<i64: 16, 32>}, {transform_indices = @transform_3, window_bounds = array<i64: 1, 32, 96>}, {transform_indices = @transform_4, window_bounds = array<i64: 1, 1, 96>}, {transform_indices = @transform_5, window_bounds = array<i64: 1, 32, 32>}, {transform_indices = @transform_6, window_bounds = array<i64: 1, 1, 32>}, {transform_indices = @transform_7, window_bounds = array<i64: 1, 1, 32>}, {transform_indices = @transform_8, window_bounds = array<i64: 1, 1, 32>}, {transform_indices = @transform_9, window_bounds = array<i64: 1, 32, 64>}, {transform_indices = @transform_10, window_bounds = array<i64: 1, 1, 64>}, {transform_indices = @transform_11, window_bounds = array<i64: 1, 64, 32>}, {transform_indices = @transform_12, window_bounds = array<i64: 1, 1, 32>}, {transform_indices = @transform_13, window_bounds = array<i64: 1, 1, 32>}, {transform_indices = @transform_14, window_bounds = array<i64: 1, 1, 32>}, {pipeline_mode = #tpu.pipeline_mode<synchronous>, transform_indices = @transform_15, window_bounds = array<i64: 16, 32>}]} {
    %c0_i32 = arith.constant 0 : i32
    %0 = arith.cmpi eq, %arg0, %c0_i32 : i32
    %1 = arith.extui %0 : i1 to i32
    %c0_i32_0 = arith.constant 0 : i32
    %2 = arith.cmpi ne, %1, %c0_i32_0 : i32
    scf.if %2 {
      %c0_88 = arith.constant 0 : index
      %c0_89 = arith.constant 0 : index
      %223 = vector.load %arg1[%c0_88, %c0_89] : memref<16x32xf32, #tpu.memory_space<vmem>>, vector<16x32xf32>
      %c0_90 = arith.constant 0 : index
      %c0_91 = arith.constant 0 : index
      %224 = vector.load %arg2[%c0_90, %c0_91] : memref<16x32xf32, #tpu.memory_space<vmem>>, vector<16x32xf32>
      %225 = arith.addf %223, %224 : vector<16x32xf32>
      %c0_92 = arith.constant 0 : index
      %c0_93 = arith.constant 0 : index
      %226 = vector.load %arg16[%c0_92, %c0_93] : memref<16x32xf32, #tpu.memory_space<vmem>>, vector<16x32xf32>
      tpu.vector_store %arg16[%c0_92, %c0_93], %225 {strides = array<i32>} : memref<16x32xf32, #tpu.memory_space<vmem>>, vector<16x32xf32>,
    } else {
    }
    %c0 = arith.constant 0 : index
    %c0_1 = arith.constant 0 : index
    %3 = vector.load %arg16[%c0, %c0_1] : memref<16x32xf32, #tpu.memory_space<vmem>>, vector<16x32xf32>
    %c0_2 = arith.constant 0 : index
    %c0_3 = arith.constant 0 : index
    %4 = vector.load %arg3[%c0_2, %c0_3] : memref<16x32xf32, #tpu.memory_space<vmem>>, vector<16x32xf32>
    %5 = arith.addf %3, %4 : vector<16x32xf32>
    %c0_4 = arith.constant 0 : index
    %c0_5 = arith.constant 0 : index
    %c0_6 = arith.constant 0 : index
    %6 = vector.load %arg4[%c0_4, %c0_5, %c0_6] : memref<1x32x96xf32, #tpu.memory_space<vmem>>, vector<1x32x96xf32>
    %7 = vector.shape_cast %6 : vector<1x32x96xf32> to vector<32x96xf32>
    %cst = arith.constant dense<0.000000e+00> : vector<16x96xf32>
    %8 = tpu.matmul %5, %7, %cst {dimension_numbers = #tpu.dot_dimension_numbers<[1], [0], [0], [1], [0, 0, 1, 1], [], []>} : vector<16x32xf32>, vector<32x96xf32>, vector<16x96xf32> -> vector<16x96xf32>
    %c0_7 = arith.constant 0 : index
    %c0_8 = arith.constant 0 : index
    %c0_9 = arith.constant 0 : index
    %9 = vector.load %arg5[%c0_7, %c0_8, %c0_9] : memref<1x1x96xf32, #tpu.memory_space<vmem>>, vector<1x1x96xf32>
    %10 = vector.shape_cast %9 : vector<1x1x96xf32> to vector<1x96xf32>
    %11 = vector.broadcast %10 : vector<1x96xf32> to vector<16x96xf32>
    %12 = arith.addf %8, %11 : vector<16x96xf32>
    %13 = vector.extract_strided_slice %12 {offsets = [0, 0], sizes = [16, 32], strides = [1, 1]} : vector<16x96xf32> to vector<16x32xf32>
    %14 = vector.extract_strided_slice %12 {offsets = [0, 32], sizes = [16, 32], strides = [1, 1]} : vector<16x96xf32> to vector<16x32xf32>
    %15 = vector.extract_strided_slice %12 {offsets = [0, 64], sizes = [16, 32], strides = [1, 1]} : vector<16x96xf32> to vector<16x32xf32>
    %16 = vector.extract_strided_slice %13 {offsets = [0, 0], sizes = [8, 32], strides = [1, 1]} : vector<16x32xf32> to vector<8x32xf32>
    %17 = vector.extract_strided_slice %14 {offsets = [0, 0], sizes = [8, 32], strides = [1, 1]} : vector<16x32xf32> to vector<8x32xf32>
    %18 = vector.extract_strided_slice %15 {offsets = [0, 0], sizes = [8, 32], strides = [1, 1]} : vector<16x32xf32> to vector<8x32xf32>
    %19 = vector.extract_strided_slice %16 {offsets = [0, 0], sizes = [8, 8], strides = [1, 1]} : vector<8x32xf32> to vector<8x8xf32>
    %20 = vector.extract_strided_slice %17 {offsets = [0, 0], sizes = [8, 8], strides = [1, 1]} : vector<8x32xf32> to vector<8x8xf32>
    %21 = vector.extract_strided_slice %18 {offsets = [0, 0], sizes = [8, 8], strides = [1, 1]} : vector<8x32xf32> to vector<8x8xf32>
    %cst_10 = arith.constant dense<0.000000e+00> : vector<8x8xf32>
    %22 = tpu.matmul %19, %20, %cst_10 {dimension_numbers = #tpu.dot_dimension_numbers<[1], [1], [0], [0], [0, 0, 1, 0], [], []>} : vector<8x8xf32>, vector<8x8xf32>, vector<8x8xf32> -> vector<8x8xf32>
    %cst_11 = arith.constant dense<0xFF800000> : vector<8xf32>
    %23 = vector.multi_reduction <maximumf>, %22, %cst_11 [1] : vector<8x8xf32> to vector<8xf32>
    %24 = vector.shape_cast %23 : vector<8xf32> to vector<8x1xf32>
    %25 = vector.broadcast %24 : vector<8x1xf32> to vector<8x8xf32>
    %26 = arith.subf %22, %25 : vector<8x8xf32>
    %27 = math.exp %26 : vector<8x8xf32>
    %cst_12 = arith.constant dense<0.000000e+00> : vector<8xf32>
    %28 = vector.multi_reduction <add>, %27, %cst_12 [1] : vector<8x8xf32> to vector<8xf32>
    %29 = vector.shape_cast %28 : vector<8xf32> to vector<8x1xf32>
    %30 = tpu.reciprocal %29 : vector<8x1xf32> -> vector<8x1xf32>
    %31 = vector.broadcast %30 : vector<8x1xf32> to vector<8x8xf32>
    %32 = arith.mulf %27, %31 : vector<8x8xf32>
    %cst_13 = arith.constant dense<0.000000e+00> : vector<8x8xf32>
    %33 = tpu.matmul %32, %21, %cst_13 {dimension_numbers = #tpu.dot_dimension_numbers<[1], [0], [0], [1], [0, 0, 1, 1], [], []>} : vector<8x8xf32>, vector<8x8xf32>, vector<8x8xf32> -> vector<8x8xf32>
    %34 = vector.extract_strided_slice %16 {offsets = [0, 8], sizes = [8, 8], strides = [1, 1]} : vector<8x32xf32> to vector<8x8xf32>
    %35 = vector.extract_strided_slice %17 {offsets = [0, 8], sizes = [8, 8], strides = [1, 1]} : vector<8x32xf32> to vector<8x8xf32>
    %36 = vector.extract_strided_slice %18 {offsets = [0, 8], sizes = [8, 8], strides = [1, 1]} : vector<8x32xf32> to vector<8x8xf32>
    %cst_14 = arith.constant dense<0.000000e+00> : vector<8x8xf32>
    %37 = tpu.matmul %34, %35, %cst_14 {dimension_numbers = #tpu.dot_dimension_numbers<[1], [1], [0], [0], [0, 0, 1, 0], [], []>} : vector<8x8xf32>, vector<8x8xf32>, vector<8x8xf32> -> vector<8x8xf32>
    %cst_15 = arith.constant dense<0xFF800000> : vector<8xf32>
    %38 = vector.multi_reduction <maximumf>, %37, %cst_15 [1] : vector<8x8xf32> to vector<8xf32>
    %39 = vector.shape_cast %38 : vector<8xf32> to vector<8x1xf32>
    %40 = vector.broadcast %39 : vector<8x1xf32> to vector<8x8xf32>
    %41 = arith.subf %37, %40 : vector<8x8xf32>
    %42 = math.exp %41 : vector<8x8xf32>
    %cst_16 = arith.constant dense<0.000000e+00> : vector<8xf32>
    %43 = vector.multi_reduction <add>, %42, %cst_16 [1] : vector<8x8xf32> to vector<8xf32>
    %44 = vector.shape_cast %43 : vector<8xf32> to vector<8x1xf32>
    %45 = tpu.reciprocal %44 : vector<8x1xf32> -> vector<8x1xf32>
    %46 = vector.broadcast %45 : vector<8x1xf32> to vector<8x8xf32>
    %47 = arith.mulf %42, %46 : vector<8x8xf32>
    %cst_17 = arith.constant dense<0.000000e+00> : vector<8x8xf32>
    %48 = tpu.matmul %47, %36, %cst_17 {dimension_numbers = #tpu.dot_dimension_numbers<[1], [0], [0], [1], [0, 0, 1, 1], [], []>} : vector<8x8xf32>, vector<8x8xf32>, vector<8x8xf32> -> vector<8x8xf32>
    %49 = vector.extract_strided_slice %16 {offsets = [0, 16], sizes = [8, 8], strides = [1, 1]} : vector<8x32xf32> to vector<8x8xf32>
    %50 = vector.extract_strided_slice %17 {offsets = [0, 16], sizes = [8, 8], strides = [1, 1]} : vector<8x32xf32> to vector<8x8xf32>
    %51 = vector.extract_strided_slice %18 {offsets = [0, 16], sizes = [8, 8], strides = [1, 1]} : vector<8x32xf32> to vector<8x8xf32>
    %cst_18 = arith.constant dense<0.000000e+00> : vector<8x8xf32>
    %52 = tpu.matmul %49, %50, %cst_18 {dimension_numbers = #tpu.dot_dimension_numbers<[1], [1], [0], [0], [0, 0, 1, 0], [], []>} : vector<8x8xf32>, vector<8x8xf32>, vector<8x8xf32> -> vector<8x8xf32>
    %cst_19 = arith.constant dense<0xFF800000> : vector<8xf32>
    %53 = vector.multi_reduction <maximumf>, %52, %cst_19 [1] : vector<8x8xf32> to vector<8xf32>
    %54 = vector.shape_cast %53 : vector<8xf32> to vector<8x1xf32>
    %55 = vector.broadcast %54 : vector<8x1xf32> to vector<8x8xf32>
    %56 = arith.subf %52, %55 : vector<8x8xf32>
    %57 = math.exp %56 : vector<8x8xf32>
    %cst_20 = arith.constant dense<0.000000e+00> : vector<8xf32>
    %58 = vector.multi_reduction <add>, %57, %cst_20 [1] : vector<8x8xf32> to vector<8xf32>
    %59 = vector.shape_cast %58 : vector<8xf32> to vector<8x1xf32>
    %60 = tpu.reciprocal %59 : vector<8x1xf32> -> vector<8x1xf32>
    %61 = vector.broadcast %60 : vector<8x1xf32> to vector<8x8xf32>
    %62 = arith.mulf %57, %61 : vector<8x8xf32>
    %cst_21 = arith.constant dense<0.000000e+00> : vector<8x8xf32>
    %63 = tpu.matmul %62, %51, %cst_21 {dimension_numbers = #tpu.dot_dimension_numbers<[1], [0], [0], [1], [0, 0, 1, 1], [], []>} : vector<8x8xf32>, vector<8x8xf32>, vector<8x8xf32> -> vector<8x8xf32>
    %64 = vector.extract_strided_slice %16 {offsets = [0, 24], sizes = [8, 8], strides = [1, 1]} : vector<8x32xf32> to vector<8x8xf32>
    %65 = vector.extract_strided_slice %17 {offsets = [0, 24], sizes = [8, 8], strides = [1, 1]} : vector<8x32xf32> to vector<8x8xf32>
    %66 = vector.extract_strided_slice %18 {offsets = [0, 24], sizes = [8, 8], strides = [1, 1]} : vector<8x32xf32> to vector<8x8xf32>
    %cst_22 = arith.constant dense<0.000000e+00> : vector<8x8xf32>
    %67 = tpu.matmul %64, %65, %cst_22 {dimension_numbers = #tpu.dot_dimension_numbers<[1], [1], [0], [0], [0, 0, 1, 0], [], []>} : vector<8x8xf32>, vector<8x8xf32>, vector<8x8xf32> -> vector<8x8xf32>
    %cst_23 = arith.constant dense<0xFF800000> : vector<8xf32>
    %68 = vector.multi_reduction <maximumf>, %67, %cst_23 [1] : vector<8x8xf32> to vector<8xf32>
    %69 = vector.shape_cast %68 : vector<8xf32> to vector<8x1xf32>
    %70 = vector.broadcast %69 : vector<8x1xf32> to vector<8x8xf32>
    %71 = arith.subf %67, %70 : vector<8x8xf32>
    %72 = math.exp %71 : vector<8x8xf32>
    %cst_24 = arith.constant dense<0.000000e+00> : vector<8xf32>
    %73 = vector.multi_reduction <add>, %72, %cst_24 [1] : vector<8x8xf32> to vector<8xf32>
    %74 = vector.shape_cast %73 : vector<8xf32> to vector<8x1xf32>
    %75 = tpu.reciprocal %74 : vector<8x1xf32> -> vector<8x1xf32>
    %76 = vector.broadcast %75 : vector<8x1xf32> to vector<8x8xf32>
    %77 = arith.mulf %72, %76 : vector<8x8xf32>
    %cst_25 = arith.constant dense<0.000000e+00> : vector<8x8xf32>
    %78 = tpu.matmul %77, %66, %cst_25 {dimension_numbers = #tpu.dot_dimension_numbers<[1], [0], [0], [1], [0, 0, 1, 1], [], []>} : vector<8x8xf32>, vector<8x8xf32>, vector<8x8xf32> -> vector<8x8xf32>
    %79 = tpu.concatenate %33, %48, %63, %78 in 1 : vector<8x8xf32>, vector<8x8xf32>, vector<8x8xf32>, vector<8x8xf32> -> vector<8x32xf32>
    %80 = vector.extract_strided_slice %13 {offsets = [8, 0], sizes = [8, 32], strides = [1, 1]} : vector<16x32xf32> to vector<8x32xf32>
    %81 = vector.extract_strided_slice %14 {offsets = [8, 0], sizes = [8, 32], strides = [1, 1]} : vector<16x32xf32> to vector<8x32xf32>
    %82 = vector.extract_strided_slice %15 {offsets = [8, 0], sizes = [8, 32], strides = [1, 1]} : vector<16x32xf32> to vector<8x32xf32>
    %83 = vector.extract_strided_slice %80 {offsets = [0, 0], sizes = [8, 8], strides = [1, 1]} : vector<8x32xf32> to vector<8x8xf32>
    %84 = vector.extract_strided_slice %81 {offsets = [0, 0], sizes = [8, 8], strides = [1, 1]} : vector<8x32xf32> to vector<8x8xf32>
    %85 = vector.extract_strided_slice %82 {offsets = [0, 0], sizes = [8, 8], strides = [1, 1]} : vector<8x32xf32> to vector<8x8xf32>
    %cst_26 = arith.constant dense<0.000000e+00> : vector<8x8xf32>
    %86 = tpu.matmul %83, %84, %cst_26 {dimension_numbers = #tpu.dot_dimension_numbers<[1], [1], [0], [0], [0, 0, 1, 0], [], []>} : vector<8x8xf32>, vector<8x8xf32>, vector<8x8xf32> -> vector<8x8xf32>
    %cst_27 = arith.constant dense<0xFF800000> : vector<8xf32>
    %87 = vector.multi_reduction <maximumf>, %86, %cst_27 [1] : vector<8x8xf32> to vector<8xf32>
    %88 = vector.shape_cast %87 : vector<8xf32> to vector<8x1xf32>
    %89 = vector.broadcast %88 : vector<8x1xf32> to vector<8x8xf32>
    %90 = arith.subf %86, %89 : vector<8x8xf32>
    %91 = math.exp %90 : vector<8x8xf32>
    %cst_28 = arith.constant dense<0.000000e+00> : vector<8xf32>
    %92 = vector.multi_reduction <add>, %91, %cst_28 [1] : vector<8x8xf32> to vector<8xf32>
    %93 = vector.shape_cast %92 : vector<8xf32> to vector<8x1xf32>
    %94 = tpu.reciprocal %93 : vector<8x1xf32> -> vector<8x1xf32>
    %95 = vector.broadcast %94 : vector<8x1xf32> to vector<8x8xf32>
    %96 = arith.mulf %91, %95 : vector<8x8xf32>
    %cst_29 = arith.constant dense<0.000000e+00> : vector<8x8xf32>
    %97 = tpu.matmul %96, %85, %cst_29 {dimension_numbers = #tpu.dot_dimension_numbers<[1], [0], [0], [1], [0, 0, 1, 1], [], []>} : vector<8x8xf32>, vector<8x8xf32>, vector<8x8xf32> -> vector<8x8xf32>
    %98 = vector.extract_strided_slice %80 {offsets = [0, 8], sizes = [8, 8], strides = [1, 1]} : vector<8x32xf32> to vector<8x8xf32>
    %99 = vector.extract_strided_slice %81 {offsets = [0, 8], sizes = [8, 8], strides = [1, 1]} : vector<8x32xf32> to vector<8x8xf32>
    %100 = vector.extract_strided_slice %82 {offsets = [0, 8], sizes = [8, 8], strides = [1, 1]} : vector<8x32xf32> to vector<8x8xf32>
    %cst_30 = arith.constant dense<0.000000e+00> : vector<8x8xf32>
    %101 = tpu.matmul %98, %99, %cst_30 {dimension_numbers = #tpu.dot_dimension_numbers<[1], [1], [0], [0], [0, 0, 1, 0], [], []>} : vector<8x8xf32>, vector<8x8xf32>, vector<8x8xf32> -> vector<8x8xf32>
    %cst_31 = arith.constant dense<0xFF800000> : vector<8xf32>
    %102 = vector.multi_reduction <maximumf>, %101, %cst_31 [1] : vector<8x8xf32> to vector<8xf32>
    %103 = vector.shape_cast %102 : vector<8xf32> to vector<8x1xf32>
    %104 = vector.broadcast %103 : vector<8x1xf32> to vector<8x8xf32>
    %105 = arith.subf %101, %104 : vector<8x8xf32>
    %106 = math.exp %105 : vector<8x8xf32>
    %cst_32 = arith.constant dense<0.000000e+00> : vector<8xf32>
    %107 = vector.multi_reduction <add>, %106, %cst_32 [1] : vector<8x8xf32> to vector<8xf32>
    %108 = vector.shape_cast %107 : vector<8xf32> to vector<8x1xf32>
    %109 = tpu.reciprocal %108 : vector<8x1xf32> -> vector<8x1xf32>
    %110 = vector.broadcast %109 : vector<8x1xf32> to vector<8x8xf32>
    %111 = arith.mulf %106, %110 : vector<8x8xf32>
    %cst_33 = arith.constant dense<0.000000e+00> : vector<8x8xf32>
    %112 = tpu.matmul %111, %100, %cst_33 {dimension_numbers = #tpu.dot_dimension_numbers<[1], [0], [0], [1], [0, 0, 1, 1], [], []>} : vector<8x8xf32>, vector<8x8xf32>, vector<8x8xf32> -> vector<8x8xf32>
    %113 = vector.extract_strided_slice %80 {offsets = [0, 16], sizes = [8, 8], strides = [1, 1]} : vector<8x32xf32> to vector<8x8xf32>
    %114 = vector.extract_strided_slice %81 {offsets = [0, 16], sizes = [8, 8], strides = [1, 1]} : vector<8x32xf32> to vector<8x8xf32>
    %115 = vector.extract_strided_slice %82 {offsets = [0, 16], sizes = [8, 8], strides = [1, 1]} : vector<8x32xf32> to vector<8x8xf32>
    %cst_34 = arith.constant dense<0.000000e+00> : vector<8x8xf32>
    %116 = tpu.matmul %113, %114, %cst_34 {dimension_numbers = #tpu.dot_dimension_numbers<[1], [1], [0], [0], [0, 0, 1, 0], [], []>} : vector<8x8xf32>, vector<8x8xf32>, vector<8x8xf32> -> vector<8x8xf32>
    %cst_35 = arith.constant dense<0xFF800000> : vector<8xf32>
    %117 = vector.multi_reduction <maximumf>, %116, %cst_35 [1] : vector<8x8xf32> to vector<8xf32>
    %118 = vector.shape_cast %117 : vector<8xf32> to vector<8x1xf32>
    %119 = vector.broadcast %118 : vector<8x1xf32> to vector<8x8xf32>
    %120 = arith.subf %116, %119 : vector<8x8xf32>
    %121 = math.exp %120 : vector<8x8xf32>
    %cst_36 = arith.constant dense<0.000000e+00> : vector<8xf32>
    %122 = vector.multi_reduction <add>, %121, %cst_36 [1] : vector<8x8xf32> to vector<8xf32>
    %123 = vector.shape_cast %122 : vector<8xf32> to vector<8x1xf32>
    %124 = tpu.reciprocal %123 : vector<8x1xf32> -> vector<8x1xf32>
    %125 = vector.broadcast %124 : vector<8x1xf32> to vector<8x8xf32>
    %126 = arith.mulf %121, %125 : vector<8x8xf32>
    %cst_37 = arith.constant dense<0.000000e+00> : vector<8x8xf32>
    %127 = tpu.matmul %126, %115, %cst_37 {dimension_numbers = #tpu.dot_dimension_numbers<[1], [0], [0], [1], [0, 0, 1, 1], [], []>} : vector<8x8xf32>, vector<8x8xf32>, vector<8x8xf32> -> vector<8x8xf32>
    %128 = vector.extract_strided_slice %80 {offsets = [0, 24], sizes = [8, 8], strides = [1, 1]} : vector<8x32xf32> to vector<8x8xf32>
    %129 = vector.extract_strided_slice %81 {offsets = [0, 24], sizes = [8, 8], strides = [1, 1]} : vector<8x32xf32> to vector<8x8xf32>
    %130 = vector.extract_strided_slice %82 {offsets = [0, 24], sizes = [8, 8], strides = [1, 1]} : vector<8x32xf32> to vector<8x8xf32>
    %cst_38 = arith.constant dense<0.000000e+00> : vector<8x8xf32>
    %131 = tpu.matmul %128, %129, %cst_38 {dimension_numbers = #tpu.dot_dimension_numbers<[1], [1], [0], [0], [0, 0, 1, 0], [], []>} : vector<8x8xf32>, vector<8x8xf32>, vector<8x8xf32> -> vector<8x8xf32>
    %cst_39 = arith.constant dense<0xFF800000> : vector<8xf32>
    %132 = vector.multi_reduction <maximumf>, %131, %cst_39 [1] : vector<8x8xf32> to vector<8xf32>
    %133 = vector.shape_cast %132 : vector<8xf32> to vector<8x1xf32>
    %134 = vector.broadcast %133 : vector<8x1xf32> to vector<8x8xf32>
    %135 = arith.subf %131, %134 : vector<8x8xf32>
    %136 = math.exp %135 : vector<8x8xf32>
    %cst_40 = arith.constant dense<0.000000e+00> : vector<8xf32>
    %137 = vector.multi_reduction <add>, %136, %cst_40 [1] : vector<8x8xf32> to vector<8xf32>
    %138 = vector.shape_cast %137 : vector<8xf32> to vector<8x1xf32>
    %139 = tpu.reciprocal %138 : vector<8x1xf32> -> vector<8x1xf32>
    %140 = vector.broadcast %139 : vector<8x1xf32> to vector<8x8xf32>
    %141 = arith.mulf %136, %140 : vector<8x8xf32>
    %cst_41 = arith.constant dense<0.000000e+00> : vector<8x8xf32>
    %142 = tpu.matmul %141, %130, %cst_41 {dimension_numbers = #tpu.dot_dimension_numbers<[1], [0], [0], [1], [0, 0, 1, 1], [], []>} : vector<8x8xf32>, vector<8x8xf32>, vector<8x8xf32> -> vector<8x8xf32>
    %143 = tpu.concatenate %97, %112, %127, %142 in 1 : vector<8x8xf32>, vector<8x8xf32>, vector<8x8xf32>, vector<8x8xf32> -> vector<8x32xf32>
    %144 = tpu.concatenate %79, %143 in 0 : vector<8x32xf32>, vector<8x32xf32> -> vector<16x32xf32>
    %c0_42 = arith.constant 0 : index
    %c0_43 = arith.constant 0 : index
    %c0_44 = arith.constant 0 : index
    %145 = vector.load %arg6[%c0_42, %c0_43, %c0_44] : memref<1x32x32xf32, #tpu.memory_space<vmem>>, vector<1x32x32xf32>
    %146 = vector.shape_cast %145 : vector<1x32x32xf32> to vector<32x32xf32>
    %cst_45 = arith.constant dense<0.000000e+00> : vector<16x32xf32>
    %147 = tpu.matmul %144, %146, %cst_45 {dimension_numbers = #tpu.dot_dimension_numbers<[1], [0], [0], [1], [0, 0, 1, 1], [], []>} : vector<16x32xf32>, vector<32x32xf32>, vector<16x32xf32> -> vector<16x32xf32>
    %c0_46 = arith.constant 0 : index
    %c0_47 = arith.constant 0 : index
    %c0_48 = arith.constant 0 : index
    %148 = vector.load %arg7[%c0_46, %c0_47, %c0_48] : memref<1x1x32xf32, #tpu.memory_space<vmem>>, vector<1x1x32xf32>
    %149 = vector.shape_cast %148 : vector<1x1x32xf32> to vector<1x32xf32>
    %150 = vector.broadcast %149 : vector<1x32xf32> to vector<16x32xf32>
    %151 = arith.addf %147, %150 : vector<16x32xf32>
    %152 = arith.addf %5, %151 : vector<16x32xf32>
    %c0_49 = arith.constant 0 : index
    %c0_50 = arith.constant 0 : index
    %c0_51 = arith.constant 0 : index
    %153 = vector.load %arg8[%c0_49, %c0_50, %c0_51] : memref<1x1x32xf32, #tpu.memory_space<vmem>>, vector<1x1x32xf32>
    %154 = vector.shape_cast %153 : vector<1x1x32xf32> to vector<1x32xf32>
    %c0_52 = arith.constant 0 : index
    %c0_53 = arith.constant 0 : index
    %c0_54 = arith.constant 0 : index
    %155 = vector.load %arg9[%c0_52, %c0_53, %c0_54] : memref<1x1x32xf32, #tpu.memory_space<vmem>>, vector<1x1x32xf32>
    %156 = vector.shape_cast %155 : vector<1x1x32xf32> to vector<1x32xf32>
    %cst_55 = arith.constant dense<0.000000e+00> : vector<16xf32>
    %157 = vector.multi_reduction <add>, %152, %cst_55 [1] : vector<16x32xf32> to vector<16xf32>
    %158 = vector.shape_cast %157 : vector<16xf32> to vector<16x1xf32>
    %cst_56 = arith.constant 3.200000e+01 : f32
    %159 = vector.broadcast %cst_56 : f32 to vector<16x1xf32>
    %160 = arith.divf %158, %159 : vector<16x1xf32>
    %161 = vector.broadcast %160 : vector<16x1xf32> to vector<16x32xf32>
    %162 = arith.subf %152, %161 : vector<16x32xf32>
    %163 = arith.mulf %162, %162 : vector<16x32xf32>
    %cst_57 = arith.constant dense<0.000000e+00> : vector<16xf32>
    %164 = vector.multi_reduction <add>, %163, %cst_57 [1] : vector<16x32xf32> to vector<16xf32>
    %165 = vector.shape_cast %164 : vector<16xf32> to vector<16x1xf32>
    %cst_58 = arith.constant 3.200000e+01 : f32
    %166 = vector.broadcast %cst_58 : f32 to vector<16x1xf32>
    %167 = arith.divf %165, %166 : vector<16x1xf32>
    %168 = vector.broadcast %160 : vector<16x1xf32> to vector<16x32xf32>
    %169 = arith.subf %152, %168 : vector<16x32xf32>
    %cst_59 = arith.constant 9.99999974E-6 : f32
    %170 = vector.broadcast %cst_59 : f32 to vector<16x1xf32>
    %171 = arith.addf %167, %170 : vector<16x1xf32>
    %172 = math.rsqrt %171 : vector<16x1xf32>
    %173 = vector.broadcast %172 : vector<16x1xf32> to vector<16x32xf32>
    %174 = arith.mulf %169, %173 : vector<16x32xf32>
    %175 = vector.broadcast %154 : vector<1x32xf32> to vector<16x32xf32>
    %176 = arith.mulf %174, %175 : vector<16x32xf32>
    %177 = vector.broadcast %156 : vector<1x32xf32> to vector<16x32xf32>
    %178 = arith.addf %176, %177 : vector<16x32xf32>
    %c0_60 = arith.constant 0 : index
    %c0_61 = arith.constant 0 : index
    %c0_62 = arith.constant 0 : index
    %179 = vector.load %arg10[%c0_60, %c0_61, %c0_62] : memref<1x32x64xf32, #tpu.memory_space<vmem>>, vector<1x32x64xf32>
    %180 = vector.shape_cast %179 : vector<1x32x64xf32> to vector<32x64xf32>
    %cst_63 = arith.constant dense<0.000000e+00> : vector<16x64xf32>
    %181 = tpu.matmul %178, %180, %cst_63 {dimension_numbers = #tpu.dot_dimension_numbers<[1], [0], [0], [1], [0, 0, 1, 1], [], []>} : vector<16x32xf32>, vector<32x64xf32>, vector<16x64xf32> -> vector<16x64xf32>
    %c0_64 = arith.constant 0 : index
    %c0_65 = arith.constant 0 : index
    %c0_66 = arith.constant 0 : index
    %182 = vector.load %arg11[%c0_64, %c0_65, %c0_66] : memref<1x1x64xf32, #tpu.memory_space<vmem>>, vector<1x1x64xf32>
    %183 = vector.shape_cast %182 : vector<1x1x64xf32> to vector<1x64xf32>
    %184 = vector.broadcast %183 : vector<1x64xf32> to vector<16x64xf32>
    %185 = arith.addf %181, %184 : vector<16x64xf32>
    %cst_67 = arith.constant 0.000000e+00 : f32
    %186 = vector.broadcast %cst_67 : f32 to vector<16x64xf32>
    %187 = arith.maximumf %185, %186 : vector<16x64xf32>
    %c0_68 = arith.constant 0 : index
    %c0_69 = arith.constant 0 : index
    %c0_70 = arith.constant 0 : index
    %188 = vector.load %arg12[%c0_68, %c0_69, %c0_70] : memref<1x64x32xf32, #tpu.memory_space<vmem>>, vector<1x64x32xf32>
    %189 = vector.shape_cast %188 : vector<1x64x32xf32> to vector<64x32xf32>
    %cst_71 = arith.constant dense<0.000000e+00> : vector<16x32xf32>
    %190 = tpu.matmul %187, %189, %cst_71 {dimension_numbers = #tpu.dot_dimension_numbers<[1], [0], [0], [1], [0, 0, 1, 1], [], []>} : vector<16x64xf32>, vector<64x32xf32>, vector<16x32xf32> -> vector<16x32xf32>
    %c0_72 = arith.constant 0 : index
    %c0_73 = arith.constant 0 : index
    %c0_74 = arith.constant 0 : index
    %191 = vector.load %arg13[%c0_72, %c0_73, %c0_74] : memref<1x1x32xf32, #tpu.memory_space<vmem>>, vector<1x1x32xf32>
    %192 = vector.shape_cast %191 : vector<1x1x32xf32> to vector<1x32xf32>
    %193 = vector.broadcast %192 : vector<1x32xf32> to vector<16x32xf32>
    %194 = arith.addf %190, %193 : vector<16x32xf32>
    %195 = arith.addf %178, %194 : vector<16x32xf32>
    %c0_75 = arith.constant 0 : index
    %c0_76 = arith.constant 0 : index
    %c0_77 = arith.constant 0 : index
    %196 = vector.load %arg14[%c0_75, %c0_76, %c0_77] : memref<1x1x32xf32, #tpu.memory_space<vmem>>, vector<1x1x32xf32>
    %197 = vector.shape_cast %196 : vector<1x1x32xf32> to vector<1x32xf32>
    %c0_78 = arith.constant 0 : index
    %c0_79 = arith.constant 0 : index
    %c0_80 = arith.constant 0 : index
    %198 = vector.load %arg15[%c0_78, %c0_79, %c0_80] : memref<1x1x32xf32, #tpu.memory_space<vmem>>, vector<1x1x32xf32>
    %199 = vector.shape_cast %198 : vector<1x1x32xf32> to vector<1x32xf32>
    %cst_81 = arith.constant dense<0.000000e+00> : vector<16xf32>
    %200 = vector.multi_reduction <add>, %195, %cst_81 [1] : vector<16x32xf32> to vector<16xf32>
    %201 = vector.shape_cast %200 : vector<16xf32> to vector<16x1xf32>
    %cst_82 = arith.constant 3.200000e+01 : f32
    %202 = vector.broadcast %cst_82 : f32 to vector<16x1xf32>
    %203 = arith.divf %201, %202 : vector<16x1xf32>
    %204 = vector.broadcast %203 : vector<16x1xf32> to vector<16x32xf32>
    %205 = arith.subf %195, %204 : vector<16x32xf32>
    %206 = arith.mulf %205, %205 : vector<16x32xf32>
    %cst_83 = arith.constant dense<0.000000e+00> : vector<16xf32>
    %207 = vector.multi_reduction <add>, %206, %cst_83 [1] : vector<16x32xf32> to vector<16xf32>
    %208 = vector.shape_cast %207 : vector<16xf32> to vector<16x1xf32>
    %cst_84 = arith.constant 3.200000e+01 : f32
    %209 = vector.broadcast %cst_84 : f32 to vector<16x1xf32>
    %210 = arith.divf %208, %209 : vector<16x1xf32>
    %211 = vector.broadcast %203 : vector<16x1xf32> to vector<16x32xf32>
    %212 = arith.subf %195, %211 : vector<16x32xf32>
    %cst_85 = arith.constant 9.99999974E-6 : f32
    %213 = vector.broadcast %cst_85 : f32 to vector<16x1xf32>
    %214 = arith.addf %210, %213 : vector<16x1xf32>
    %215 = math.rsqrt %214 : vector<16x1xf32>
    %216 = vector.broadcast %215 : vector<16x1xf32> to vector<16x32xf32>
    %217 = arith.mulf %212, %216 : vector<16x32xf32>
    %218 = vector.broadcast %197 : vector<1x32xf32> to vector<16x32xf32>
    %219 = arith.mulf %217, %218 : vector<16x32xf32>
    %220 = vector.broadcast %199 : vector<1x32xf32> to vector<16x32xf32>
    %221 = arith.addf %219, %220 : vector<16x32xf32>
    %c0_86 = arith.constant 0 : index
    %c0_87 = arith.constant 0 : index
    %222 = vector.load %arg16[%c0_86, %c0_87] : memref<16x32xf32, #tpu.memory_space<vmem>>, vector<16x32xf32>
    tpu.vector_store %arg16[%c0_86, %c0_87], %221 {strides = array<i32>} : memref<16x32xf32, #tpu.memory_space<vmem>>, vector<16x32xf32>,
    return
  }
  func.func @transform_0(%arg0: i32) -> (i32, i32) {
    %c0_i32 = arith.constant 0 : i32
    %c0_i32_0 = arith.constant 0 : i32
    %c0_i32_1 = arith.constant 0 : i32
    return %c0_i32, %c0_i32_0 : i32, i32
  }
  func.func @transform_1(%arg0: i32) -> (i32, i32) {
    %c0_i32 = arith.constant 0 : i32
    %c0_i32_0 = arith.constant 0 : i32
    %c0_i32_1 = arith.constant 0 : i32
    return %c0_i32, %c0_i32_0 : i32, i32
  }
  func.func @transform_2(%arg0: i32) -> (i32, i32) {
    %c0_i32 = arith.constant 0 : i32
    %c0_i32_0 = arith.constant 0 : i32
    %c0_i32_1 = arith.constant 0 : i32
    return %c0_i32, %c0_i32_0 : i32, i32
  }
  func.func @transform_3(%arg0: i32) -> (i32, i32, i32) {
    %c0_i32 = arith.constant 0 : i32
    %c0_i32_0 = arith.constant 0 : i32
    %c0_i32_1 = arith.constant 0 : i32
    return %arg0, %c0_i32, %c0_i32_0 : i32, i32, i32
  }
  func.func @transform_4(%arg0: i32) -> (i32, i32, i32) {
    %c0_i32 = arith.constant 0 : i32
    %c0_i32_0 = arith.constant 0 : i32
    %c0_i32_1 = arith.constant 0 : i32
    return %arg0, %c0_i32, %c0_i32_0 : i32, i32, i32
  }
  func.func @transform_5(%arg0: i32) -> (i32, i32, i32) {
    %c0_i32 = arith.constant 0 : i32
    %c0_i32_0 = arith.constant 0 : i32
    %c0_i32_1 = arith.constant 0 : i32
    return %arg0, %c0_i32, %c0_i32_0 : i32, i32, i32
  }
  func.func @transform_6(%arg0: i32) -> (i32, i32, i32) {
    %c0_i32 = arith.constant 0 : i32
    %c0_i32_0 = arith.constant 0 : i32
    %c0_i32_1 = arith.constant 0 : i32
    return %arg0, %c0_i32, %c0_i32_0 : i32, i32, i32
  }
  func.func @transform_7(%arg0: i32) -> (i32, i32, i32) {
    %c0_i32 = arith.constant 0 : i32
    %c0_i32_0 = arith.constant 0 : i32
    %c0_i32_1 = arith.constant 0 : i32
    return %arg0, %c0_i32, %c0_i32_0 : i32, i32, i32
  }
  func.func @transform_8(%arg0: i32) -> (i32, i32, i32) {
    %c0_i32 = arith.constant 0 : i32
    %c0_i32_0 = arith.constant 0 : i32
    %c0_i32_1 = arith.constant 0 : i32
    return %arg0, %c0_i32, %c0_i32_0 : i32, i32, i32
  }
  func.func @transform_9(%arg0: i32) -> (i32, i32, i32) {
    %c0_i32 = arith.constant 0 : i32
    %c0_i32_0 = arith.constant 0 : i32
    %c0_i32_1 = arith.constant 0 : i32
    return %arg0, %c0_i32, %c0_i32_0 : i32, i32, i32
  }
  func.func @transform_10(%arg0: i32) -> (i32, i32, i32) {
    %c0_i32 = arith.constant 0 : i32
    %c0_i32_0 = arith.constant 0 : i32
    %c0_i32_1 = arith.constant 0 : i32
    return %arg0, %c0_i32, %c0_i32_0 : i32, i32, i32
  }
  func.func @transform_11(%arg0: i32) -> (i32, i32, i32) {
    %c0_i32 = arith.constant 0 : i32
    %c0_i32_0 = arith.constant 0 : i32
    %c0_i32_1 = arith.constant 0 : i32
    return %arg0, %c0_i32, %c0_i32_0 : i32, i32, i32
  }
  func.func @transform_12(%arg0: i32) -> (i32, i32, i32) {
    %c0_i32 = arith.constant 0 : i32
    %c0_i32_0 = arith.constant 0 : i32
    %c0_i32_1 = arith.constant 0 : i32
    return %arg0, %c0_i32, %c0_i32_0 : i32, i32, i32
  }
  func.func @transform_13(%arg0: i32) -> (i32, i32, i32) {
    %c0_i32 = arith.constant 0 : i32
    %c0_i32_0 = arith.constant 0 : i32
    %c0_i32_1 = arith.constant 0 : i32
    return %arg0, %c0_i32, %c0_i32_0 : i32, i32, i32
  }
  func.func @transform_14(%arg0: i32) -> (i32, i32, i32) {
    %c0_i32 = arith.constant 0 : i32
    %c0_i32_0 = arith.constant 0 : i32
    %c0_i32_1 = arith.constant 0 : i32
    return %arg0, %c0_i32, %c0_i32_0 : i32, i32, i32
  }
  func.func @transform_15(%arg0: i32) -> (i32, i32) {
    %c0_i32 = arith.constant 0 : i32
    %c0_i32_0 = arith.constant 0 : i32
    %c0_i32_1 = arith.constant 0 : i32
    return %c0_i32, %c0_i32_0 : i32, i32
  }
}

</mosaic_0001>

<bundles_post_ra>
// kernel: transformer_encoder_forward.1
= control target key start
LH: loop header
LB: loop body
LE: loop exit
PB: predicated region body
PF: predicated region fallthrough
CT: control target
= control target key end

     0   :  { %s2962_s0 = inlined_call_operand.hbm [shape: f32[16,32], index: 0, kind: input, shape index: {}]   ;;  %s2963_s1 = inlined_call_operand.vmem [shape: f32[16,32], index: 1, kind: input, shape index: {}]   ;;  %s2964_s2 = inlined_call_operand.vmem [shape: f32[16,32], index: 2, kind: input, shape index: {}]   ;;  %s2965_s3 = inlined_call_operand.vmem [shape: f32[2,32,96], index: 3, kind: input, shape index: {}]   ;;  %s2966_s4 = inlined_call_operand.vmem [shape: f32[2,1,96], index: 4, kind: input, shape index: {}]   ;;  %s2967_s5 = inlined_call_operand.vmem [shape: f32[2,32,32], index: 5, kind: input, shape index: {}]   ;;  %s2968_s6 = inlined_call_operand.vmem [shape: f32[2,1,32], index: 6, kind: input, shape index: {}]   ;;  %s2969_s7 = inlined_call_operand.vmem [shape: f32[2,1,32], index: 7, kind: input, shape index: {}]   ;;  %s2970_s8 = inlined_call_operand.hbm [shape: f32[2,1,32], index: 8, kind: input, shape index: {}]   ;;  %s2971_s9 = inlined_call_operand.vmem [shape: f32[2,32,64], index: 9, kind: input, shape index: {}]   ;;  %s2972_s10 = inlined_call_operand.hbm [shape: f32[2,1,64], index: 10, kind: input, shape index: {}]   ;;  %s2973_s11 = inlined_call_operand.vmem [shape: f32[2,64,32], index: 11, kind: input, shape index: {}]   ;;  %s2974_s12 = inlined_call_operand.hbm [shape: f32[2,1,32], index: 12, kind: input, shape index: {}]   ;;  %s2975_s13 = inlined_call_operand.hbm [shape: f32[2,1,32], index: 13, kind: input, shape index: {}]   ;;  %s2976_s14 = inlined_call_operand.hbm [shape: f32[2,1,32], index: 14, kind: input, shape index: {}]   ;;  %s2977_s15 = inlined_call_operand.hbm [shape: f32[16,32], index: 15, kind: output, shape index: {}]  }
   0x1   :  { %2983 = sst [smem:[#allocation22_spill]] %s2962_s0 }
   0x2   :  { %2984 = sst [smem:[#allocation23_spill]] %s2963_s1 }
   0x3   :  { %2985 = sst [smem:[#allocation24_spill]] %s2964_s2 }
   0x4   :  { %2986 = sst [smem:[#allocation25_spill]] %s2969_s7 }
   0x5   :  { %2987 = sst [smem:[#allocation26_spill]] %s2970_s8 }
   0x6   :  { %2988 = sst [smem:[#allocation27_spill]] %s2971_s9 }
   0x7   :  { %2989 = sst [smem:[#allocation28_spill]] %s2973_s11 }
   0x8   :  { %2990 = sst [smem:[#allocation29_spill]] %s2974_s12 }
   0x9   :  { %2991 = sst [smem:[#allocation30_spill]] %s2977_s15 }
   0xa   :  { %20 = vsyncpa [#allocation3], 0 }
   0xb   :  { %21 = vsyncpa [#allocation6], 0 }
   0xc   :  { %23 = vsyncpa [#allocation6 + $0x1], 0 }
   0xd   :  { %24 = vsyncpa [#allocation9], 0 }
   0xe   :  { %26 = vsyncpa [#allocation9 + $0x1], 0 }
   0xf   :  { %27 = vsyncpa [#allocation12], 0 }
  0x10   :  { %29 = vsyncpa [#allocation12 + $0x1], 0 }
  0x11   :  { %30 = vsyncpa [#allocation4], 0  ;;  %s2498_s18 = smov 0   ;;  %s2500_s19 = smov 0  }
  0x12   :  { %s2502_s20 = smov 0   ;;  %s2504_s21 = smov 0  }
  0x13 LB: > { %2992 = sst [smem:[#allocation19_spill]] %s2392_s20  ;;  %s2519_s22 = sadd.s32 1, %s2396_s21   ;;  %s2396_s21 = sphi %s2504_s21, %s3021_s21   ;;  %s2392_s20 = sphi %s2502_s20, %s3023_s20   ;;  %s2388_s19 = sphi %s2500_s19, %s3025_s19   ;;  %s2384_s18 = sphi %s2498_s18, %s3024_s18  }
  0x14   : > { %2993 = sst [smem:[#allocation20_spill]] %s2519_s22  ;;  %s236_s23 = sadd.s32 1, %s2392_s20 }
  0x15   : > { %s233_s24 = ssub.s32 %s2396_s21, %s2519_s22  ;;  %p243_p0 = scmp.ne.s32.totalorder %s2392_s20, %s2388_s19 }
  0x16   : > { %p234_p1 = scmp.eq.s32.totalorder %s233_s24, 0  ;;  %p244_p2 = scmp.eq.s32.totalorder %s2396_s21, 0 }
  0x17   : > { %p2032_p3 = scmp.lt.s32.totalorder %s2396_s21, 2  ;;  %s2533_s27 = sand.u32 1, %s2392_s20  }
  0x18   : > { %s2529_s25 = scalar_select %p234_p1, %s2392_s20, %s236_s23  }
  0x19   : > { %p245_p4 = por %p244_p2, %p243_p0  ;;  %s2995_s8 = sld [smem:[#allocation26_spill]] }
  0x1a   : > { %2994 = sst [smem:[#allocation21_spill]] %s2529_s25  ;;  %s507_s17 = scalar_lea.vmem [#allocation5], %s2533_s27 }
  0x1b   : > { %s514_s22 = sshll.u32 %s507_s17, 4  ;;  %p2540_p5 = pnand %p2032_p3, %p245_p4  ;;  %s515_s22 = int_to_ptr.vmem [resolvable:$true] %s514_s22 }
  0x1c   : > { %s2997_s12 = sld [smem:[#allocation29_spill]]  ;;  %s2998_s15 = sand.u32 1, %s2396_s21  }
  0x1d   : > { %s2552_s28 = scalar_lea.sflag [#allocation6], %s2998_s15  ;;  %p2556_p7 = pneg %p2540_p5 }
  0x1f   : > { %s510_s30 = scalar_lea.hbm %s2995_s8, %s2396_s21 }
  0x20   : > { %s512_s16 = sshll.u32 %s510_s30, 4  ;;  %s513_s16 = int_to_ptr.hbm [resolvable:$true] %s512_s16 }
  0x21   : > { %s2138_s29 = sshra.s32 %s513_s16, 4  ;;  %s2139_s29 = int_to_ptr.hbm [resolvable:$true] %s2138_s29 }
  0x22   : > { %s560_s26 = scalar_lea.hbm %s2997_s12, %s2396_s21  ;;  %s2140_s30 = scalar_lea.hbm %s2139_s29, 1 }
  0x23   : > { %s2548_s20 = sshll.u32 %s560_s26, 4  ;;  %p2141_p6 = scmp.ne.s32.totalorder %s2139_s29, %s2140_s30  ;;  %s563_s20 = int_to_ptr.hbm [resolvable:$true] %s2548_s20 }
  0x24   : > { %s2145_s26 = scalar_lea.hbm %s2995_s8, 2  ;;  %p2146_p10 = scmp.lt.s32.totalorder %s2139_s29, %s2995_s8 }
  0x25   : > { %p2143_p8 = pnand %p2556_p7, %p2141_p6  ;;  %p2147_p11 = scmp.lt.s32.totalorder %s2145_s26, %s2140_s30 }
  0x27   : > { %p2144_p9 = pneg %p2143_p8  ;;  %p2148_p12 = por %p2147_p11, %p2146_p10 }
  0x29   : > { %p2149_p13 = pnand %p2148_p12, %p2144_p9 }
  0x2b   : > { %2152 = shalt.err (!%p2149_p13)
}
  0x2c   : > { %2018 = dma.hbm_to_vmem [thread:$0]  (!%p2540_p5), %s513_s16, 16, %s515_s22, %s2552_s28  }
  0x2d   : > { %s557_s1 = scalar_lea.vmem [#allocation8], %s2533_s27  ;;  %s3000_s23 = sand.u32 1, %s2396_s21  }
  0x2e   : > { %s564_s25 = sshll.u32 %s557_s1, 4  ;;  %s2575_s11 = scalar_lea.sflag [#allocation9], %s3000_s23  ;;  %s565_s25 = int_to_ptr.vmem [resolvable:$true] %s564_s25 }
  0x2f   : > { %s2168_s2 = sshra.s32 %s563_s20, 4  ;;  %s2175_s15 = scalar_lea.hbm %s2997_s12, 2  ;;  %s2169_s2 = int_to_ptr.hbm [resolvable:$true] %s2168_s2 }
  0x30   : > { %s2170_s29 = scalar_lea.hbm %s2169_s2, 1  ;;  %p2176_p3 = scmp.lt.s32.totalorder %s2169_s2, %s2997_s12 }
  0x31   : > { %p2171_p0 = scmp.ne.s32.totalorder %s2169_s2, %s2170_s29  ;;  %p2177_p4 = scmp.lt.s32.totalorder %s2175_s15, %s2170_s29 }
  0x33   : > { %p2173_p1 = pnand %p2171_p0, %p2556_p7  ;;  %p2178_p6 = por %p2177_p4, %p2176_p3 }
  0x35   : > { %p2174_p2 = pneg %p2173_p1 }
  0x37   : > { %p2179_p8 = pnand %p2178_p6, %p2174_p2 }
  0x39   : > { %2182 = shalt.err (!%p2179_p8)
}
  0x3a   : > { %2024 = dma.hbm_to_vmem [thread:$0]  (!%p2540_p5), %s563_s20, 16, %s565_s25, %s2575_s11  }
  0x3b   : > { %s2589_s1 = sadd.s32 4294967295, %s2396_s21   ;;  %p249_p9 = scmp.ne.s32.totalorder %s2388_s19, %s2384_s18 }
  0x3c   : > { %p250_p10 = scmp.eq.s32.totalorder %s2589_s1, 0  ;;  %p1939_p11 = scmp.ge.s32.totalorder %s2396_s21, 1 }
  0x3d   : > { %p437_p12 = scmp.lt.s32.totalorder %s2396_s21, 3  ;;  %p1940_p0 = scmp.ne.s32.totalorder %s2589_s1, 0 }
  0x3e   : > { %p2598_p13 = por %p250_p10, %p249_p9  ;;  %s3003_s0 = sld [smem:[#allocation22_spill]] }
  0x3f   : > { %p2603_p1 = pnand %p1939_p11, %p437_p12  ;;  %s2398_s18 = smov [#allocation2]  }
  0x40   : > { %s450_s2 = sshll.u32 %s2398_s18, 4  ;;  %s535_s26 = scalar_lea.hbm %s2972_s10, %s2396_s21  ;;  %s451_s2 = int_to_ptr.vmem [resolvable:$true] %s450_s2 }
  0x41   : > { %p2011_p2 = pneg %p2603_p1  ;;  %s537_s15 = sshll.u32 %s535_s26, 4  ;;  %s538_s15 = int_to_ptr.hbm [resolvable:$true] %s537_s15 }
  0x42   : > { %s2399_s22 = smov 128   ;;  %s2400_s12 = smov 8  }
  0x43   : > { %p2012_p3 = pnand %p2011_p2, %p250_p10  ;;  %s532_s16 = scalar_lea.vmem [#allocation7], %s2533_s27 }
  0x44   : > { %s448_s23 = sshll.u32 %s3003_s0, 4  ;;  %s539_s25 = sshll.u32 %s532_s16, 4  ;;  %s449_s23 = int_to_ptr.hbm [resolvable:$true] %s448_s23  ;;  %s540_s25 = int_to_ptr.vmem [resolvable:$true] %s539_s25 }
  0x45   : > { %2014 = dma.hbm_to_vmem [thread:$0]  (!%p2012_p3), %s449_s23, 256, %s451_s2, [#allocation3], %s2399_s22, %s2399_s22, %s2400_s12  }
  0x46   : > { %s2228_s0 = sshra.s32 %s538_s15, 4  ;;  %s2235_s29 = scalar_lea.hbm %s2972_s10, 2  ;;  %s2229_s0 = int_to_ptr.hbm [resolvable:$true] %s2228_s0 }
  0x47   : > { %s2230_s9 = scalar_lea.hbm %s2229_s0, 1  ;;  %p2236_p9 = scmp.lt.s32.totalorder %s2229_s0, %s2972_s10 }
  0x48   : > { %p2231_p4 = scmp.ne.s32.totalorder %s2229_s0, %s2230_s9  ;;  %p2237_p11 = scmp.lt.s32.totalorder %s2235_s29, %s2230_s9 }
  0x4a   : > { %p2233_p6 = pnand %p2231_p4, %p2556_p7  ;;  %p2238_p12 = por %p2237_p11, %p2236_p9 }
  0x4c   : > { %p2234_p8 = pneg %p2233_p6 }
  0x4e   : > { %p2239_p2 = pnand %p2238_p12, %p2234_p8 }
  0x50   : > { %2242 = shalt.err (!%p2239_p2)
}
  0x51   : > { %2021 = dma.hbm_to_vmem [thread:$0]  (!%p2540_p5), %s538_s15, 16, %s540_s25, %s2552_s28  }
  0x52   : > { %s577_s7 = scalar_lea.hbm %s2975_s13, %s2396_s21  ;;  %s574_s2 = scalar_lea.vmem [#allocation10], %s2533_s27 }
  0x53   : > { %s581_s22 = sshll.u32 %s574_s2, 4  ;;  %s579_s16 = sshll.u32 %s577_s7, 4  ;;  %s582_s22 = int_to_ptr.vmem [resolvable:$true] %s581_s22  ;;  %s580_s16 = int_to_ptr.hbm [resolvable:$true] %s579_s16 }
  0x54   : > { %s2258_s0 = sshra.s32 %s580_s16, 4  ;;  %s2265_s28 = scalar_lea.hbm %s2975_s13, 2  ;;  %s2259_s0 = int_to_ptr.hbm [resolvable:$true] %s2258_s0 }
  0x55   : > { %s2260_s9 = scalar_lea.hbm %s2259_s0, 1  ;;  %p2266_p8 = scmp.lt.s32.totalorder %s2259_s0, %s2975_s13 }
  0x56   : > { %p2261_p3 = scmp.ne.s32.totalorder %s2259_s0, %s2260_s9  ;;  %p2267_p9 = scmp.lt.s32.totalorder %s2265_s28, %s2260_s9 }
  0x58   : > { %p2263_p4 = pnand %p2261_p3, %p2556_p7  ;;  %p2268_p11 = por %p2267_p9, %p2266_p8 }
  0x5a   : > { %p2264_p6 = pneg %p2263_p4 }
  0x5c   : > { %p2269_p12 = pnand %p2268_p11, %p2264_p6 }
  0x5e   : > { %2272 = shalt.err (!%p2269_p12)
}
  0x5f   : > { %2027 = dma.hbm_to_vmem [thread:$0]  (!%p2540_p5), %s580_s16, 16, %s582_s22, %s2575_s11  }
  0x60   : > { %s594_s12 = scalar_lea.hbm %s2976_s14, %s2396_s21  ;;  %s591_s7 = scalar_lea.vmem [#allocation11], %s2533_s27 }
  0x61   : > { %s596_s23 = sshll.u32 %s594_s12, 4  ;;  %s598_s2 = sshll.u32 %s591_s7, 4  ;;  %s597_s23 = int_to_ptr.hbm [resolvable:$true] %s596_s23  ;;  %s599_s2 = int_to_ptr.vmem [resolvable:$true] %s598_s2 }
  0x62   : > { %s589_s0 = scalar_lea.sflag [#allocation12], %s2533_s27  ;;  %s2288_s9 = sshra.s32 %s597_s23, 4  ;;  %s2289_s9 = int_to_ptr.hbm [resolvable:$true] %s2288_s9 }
  0x63   : > { %s2290_s18 = scalar_lea.hbm %s2289_s9, 1  ;;  %s2295_s11 = scalar_lea.hbm %s2976_s14, 2 }
  0x64   : > { %p2291_p2 = scmp.ne.s32.totalorder %s2289_s9, %s2290_s18  ;;  %p2296_p6 = scmp.lt.s32.totalorder %s2289_s9, %s2976_s14 }
  0x65   : > { %p2297_p8 = scmp.lt.s32.totalorder %s2295_s11, %s2290_s18 }
  0x66   : > { %p2293_p3 = pnand %p2291_p2, %p2556_p7 }
  0x67   : > { %p2298_p9 = por %p2297_p8, %p2296_p6 }
  0x68   : > { %p2294_p4 = pneg %p2293_p3 }
  0x6a   : > { %p2299_p11 = pnand %p2298_p9, %p2294_p4 }
  0x6c   : > { %2302 = shalt.err (!%p2299_p11)
}
  0x6d   : > { %2030 = dma.hbm_to_vmem [thread:$0]  (!%p2540_p5), %s597_s23, 16, %s599_s2, %s589_s0  }
  0x6e   : > { %607 = sbr.rel (%p2603_p1) target bundleno = 2890 (0xb4a), region = 80 }
  0x73   : > { %2363 = dma.done.wait (%p250_p10), [#allocation3], 256  }
  0x74   : > { %2365 = vsyncadd (%p250_p10), [#allocation3], 4294967040  ;;  %s614_s21 = sand.u32 1, %s2589_s1   ;;  %s2670_s27 = sand.u32 1, %s2388_s19  }
  0x75   : > { %s615_s17 = scalar_lea.sflag [#allocation6], %s614_s21 }
  0x76   : > { %2367 = dma.done.wait (%p2598_p13), %s615_s17, 32  }
  0x77   : > { %2369 = vsyncadd (%p2598_p13), %s615_s17, 4294967264  ;;  %s633_s20 = scalar_lea.sflag [#allocation9], %s614_s21 }
  0x78   : > { %2371 = dma.done.wait (%p2598_p13), %s633_s20, 32  }
  0x79   : > { %2373 = vsyncadd (%p2598_p13), %s633_s20, 4294967264  ;;  %s651_s26 = scalar_lea.sflag [#allocation12], %s2670_s27 }
  0x7a   : > { %2375 = dma.done.wait (%p2598_p13), %s651_s26, 16  }
  0x7b   : > { %2377 = vsyncadd (%p2598_p13), %s651_s26, 4294967280  ;;  %p740_p5 = scmp.lt.s32.totalorder %s2589_s1, 1  ;;  %s3004_s12 = sld [smem:[#allocation25_spill]] }
  0x7c   : > { %s3005_s0 = sld [smem:[#allocation27_spill]] }
  0x7d   : > { %s2692_s23 = scalar_select %p740_p5, %s2589_s1, 1 }
  0x7e   : > { %s3006_s9 = sld [smem:[#allocation28_spill]] }
  0x7f   : > { %s1989_s7 = sshll.u32 %s2692_s23, 5  ;;  %s1992_s18 = sshll.u32 %s2692_s23, 6 }
  0x80   : > { %s744_s8 = scalar_lea.vmem %s2965_s3, %s1989_s7  ;;  %s2705_s22 = scalar_lea.vmem %s2967_s5, %s1989_s7 }
  0x81   : > { %s758_s30 = scalar_lea.vmem %s3004_s12, %s2692_s23  ;;  %772 = sbr.rel (%p1940_p0) target bundleno = 141 (0x8d), region = 108 }
  0x82   : > { %s2718_s24 = scalar_lea.vmem %s3005_s0, %s1989_s7  ;;  %s3007_s21 = sld [smem:[#allocation23_spill]] (!%p1940_p0) }
  0x84   : > { %s2724_s28 = scalar_lea.vmem %s3006_s9, %s1992_s18 }
  0x86   : > { %v773_v0 = vld [vmem:[#allocation2] sm:$0xff]  ;;  %vm779_vm0 = vcmask 261120   ;;  %v774_v2 = vld [vmem:[#allocation2 + $0x8] sm:$0xff] }
  0x88   : > { %s3008_s17 = smov %s3007_s21  ;;  %v775_v1 = vld [vmem:[%s3007_s21] sm:$0xff] }
  0x89   : > { %v777_v3 = vadd.f32 %v775_v1, %v773_v0  ;;  %v776_v4 = vld [vmem:[%s3008_s17 + $0x8] sm:$0xff] }
  0x8a   : > { %v778_v5 = vadd.f32 %v776_v4, %v774_v2 }
  0x8b   : > { %780 = vst.msk [vmem:[#allocation13] sm:$0xff] %vm779_vm0, %v777_v3 }
  0x8c   : > { %781 = vst.msk [vmem:[#allocation13 + $0x8] sm:$0xff] %vm779_vm0, %v778_v5 }
  0x8d PF: > { %v791_v6 = vld [vmem:[%s744_s8 + $0x18] sm:$0xff]  ;;  %v790_v7 = vld [vmem:[%s744_s8 + $0x10] sm:$0xff]  ;;  %v789_v8 = vld [vmem:[%s744_s8 + $0x8] sm:$0xff]  ;;  %s3009_s9 = sld [smem:[#allocation24_spill]]  ;;  %vm796_vm1 = vcmask 261120   ;;  %s3010_s2 = scalar_lea.vmem %s2966_s4, %s2692_s23  ;;  %vm829_vm2 = vcmask 64512  }
  0x8e   : > { %815 = vmatpush.msra.mxu0 %v791_v6  ;;  %v788_v11 = vld [vmem:[%s744_s8] sm:$0xff]  ;;  %s2401_s8 = smov 120   ;;  %s2402_s0 = smov 96  }
  0x8f   : > { %v2746_v13 = vld [vmem:[%s3010_s2] ss:$0 sm:$0xff]  ;;  %s2403_s18 = smov 64   ;;  %s2404_s29 = smov 80  }
  0x90   : > { %816 = vmatpush.msra.mxu0 %v790_v7  ;;  %s2405_s11 = smov 112   ;;  %s2406_s16 = smov 88  }
  0x91   : > { %s2407_s12 = smov 48   ;;  %s2408_s15 = smov 72  }
  0x92   : > { %v782_v9 = vld [vmem:[#allocation13] sm:$0xff]  ;;  %817 = vmatpush.msra.mxu0 %v789_v8  ;;  %s2409_s7 = smov 56   ;;  %s2410_s20 = smov 104  }
  0x93   : > { %v784_v10 = vld [vmem:[%s3009_s9] sm:$0xff]  ;;  %v785_v44 = vld [vmem:[%s3009_s9 + $0x8] sm:$0xff]  ;;  %s2411_s26 = smov 40   ;;  %s2412_s2 = smov 16  }
  0x94   : > { %v2737_v12 = vadd.f32 %v784_v10, %v782_v9  ;;  %818 = vmatpush.msra.mxu0 %v788_v11  ;;  %v783_v43 = vld [vmem:[#allocation13 + $0x8] sm:$0xff]  ;;  %s3015_s21 = scalar_lea.vmem [#allocation5], %s2670_s27  ;;  %s3019_s25 = scalar_lea.vmem [#allocation11], %s2670_s27 }
  0x95   : > { %v2779_v46 = vadd.f32 %v785_v44, %v783_v43  ;;  %p2034_p7 = scmp.eq.s32.totalorder %s2589_s1, 1 }
  0x96   : > { %1953 = vmatmul.msk.f32.vlgmr.msra.gmra.mxu0 %vm796_vm1, %v2737_v12 }
  0x9e   : > { %1954 = vmatmul.msk.f32.gmra.mxu0 %vm796_vm1, %v2779_v46 }
 0x113   : > { %v820_v14 = vpop.f32.mrf.mxu0 }
 0x114   : > { %v2749_v15 = vadd.f32 %v2746_v13, %v820_v14 }
 0x116   : > { %904 = vrot.lane.b32.xlu2 %v2749_v15, %s2401_s8  ;;  %827 = vrot.lane.b32.xlu0 %v2749_v15, %s2402_s0 }
 0x11b   : > { %v823_v52 = vpop.f32.mrf.mxu0 }
 0x11c   : > { %v2788_v53 = vadd.f32 %v2746_v13, %v823_v52 }
 0x11e   : > { %878 = vrot.lane.b32.xlu2 %v2749_v15, %s2403_s18 }
 0x126   : > { %984 = vrot.lane.b32.xlu2 %v2749_v15, %s2404_s29 }
 0x12e   : > { %982 = vrot.lane.b32.xlu2 %v2749_v15, %s2405_s11 }
 0x170   : > { %v905_v16 = vpop.permute.xlu2 %904 }
 0x178   : > { %v879_v17 = vpop.permute.xlu2 %878 }
 0x180   : > { %v985_v19 = vpop.permute.xlu2 %984 }
 0x188   : > { %v828_v18 = vpop.permute.xlu0 %827  ;;  %v983_v40 = vpop.permute.xlu2 %982 }
 0x189   : > { %1955 = vmatpush.xpose.msk.msra.mxu1 %vm829_vm2, %v828_v18 }
 0x18c   : > { %1956 = vmatmul.msk.f32.vlgmr.msra.gmra.mxu1 %vm829_vm2, %v2749_v15 }
 0x18d   : > { %899 = vmatpush.msrb.mxu1 %v879_v17 }
 0x18f   : > { %1961 = vmatpush.xpose.msk.msra.mxu1 %vm829_vm2, %v985_v19 }
 0x209   : > { %v851_v20 = vpop.f32.mrf.mxu1 }
 0x20a   : > { %v854_v21 = vsel %vm829_vm2, %v851_v20, -inf }
 0x20b   : > { %855 = vmax.xlane.f32.xlu0 %v854_v21 }
 0x27e   : > { %v856_v22 = vpop.xlane.xlu0 %855 }
 0x27f   : > { %v857_v23 = vsub.f32 %v851_v20, %v856_v22 }
 0x281   : > { %v858_v24 = vmul.f32 1.442695, %v857_v23 }
 0x283   : > { %2096 = vpow2.f32 %v858_v24 }
 0x289   : > { %v2097_v25 = vpop.eup %2096 }
 0x28a   : > { %v860_v26 = vsel %vm829_vm2, %v2097_v25, 0.0 }
 0x28b   : > { %861 = vadd.xlane.f32.xlu1 %v860_v26 }
 0x2a4   : > { %906 = vrot.lane.b32.xlu1 %v2749_v15, %s2406_s16 }
 0x2fe   : > { %v862_v27 = vpop.xlane.xlu1 %861 }
 0x2ff   : > { %2098 = vrcp.f32 %v862_v27  ;;  %v874_v31 = vand.u32 2147483648, %v862_v27  ;;  %v872_v33 = vand.u32 2147483647, %v862_v27  ;;  %vm868_vm4 = vweird.f32 %v862_v27 }
 0x301   : > { %v875_v35 = vor.u32 1.1754944e-38, %v874_v31  ;;  %vm873_vm6 = vcmp.eq.f32.partialorder %v872_v33, 8.507059e+37 }
 0x305   : > { %v2099_v28 = vpop.eup %2098 }
 0x306   : > { %v864_v29 = vmul.f32 %v2099_v28, %v862_v27  ;;  %vm869_vm3 = vweird.f32 %v2099_v28 }
 0x307   : > { %vm870_vm5 = vmor %vm868_vm4, %vm869_vm3 }
 0x308   : > { %v865_v30 = vsub.f32 1.0, %v864_v29 }
 0x30a   : > { %v866_v32 = vmul.f32 %v2099_v28, %v865_v30 }
 0x30c   : > { %v867_v34 = vadd.f32 %v2099_v28, %v866_v32 }
 0x30e   : > { %v871_v36 = vsel %vm870_vm5, %v2099_v28, %v867_v34 }
 0x30f   : > { %v876_v37 = vsel %vm873_vm6, %v875_v35, %v871_v36 }
 0x310   : > { %v877_v38 = vmul.f32 %v2097_v25, %v876_v37 }
 0x312   : > { %1957 = vmatmul.msk.f32.vlgmr.msrb.gmra.mxu1 %vm829_vm2, %v877_v38 }
 0x316   : > { %v907_v39 = vpop.permute.xlu1 %906 }
 0x317   : > { %1958 = vmatpush.xpose.msk.msra.mxu3 %vm829_vm2, %v907_v39 }
 0x31a   : > { %1959 = vmatmul.msk.f32.vlgmr.msra.gmra.mxu3 %vm829_vm2, %v905_v16  ;;  %1962 = vmatmul.msk.f32.vlgmr.msra.gmra.mxu1 %vm829_vm2, %v983_v40 }
 0x38f   : > { %v2773_v41 = vpop.f32.mrf.mxu1 }
 0x397   : > { %v1007_v42 = vpop.f32.mrf.mxu1 }
 0x398   : > { %v1010_v45 = vsel %vm829_vm2, %v1007_v42, -inf }
 0x399   : > { %1011 = vmax.xlane.f32.xlu1 %v1010_v45 }
 0x39d   : > { %v929_v47 = vpop.f32.mrf.mxu3 }
 0x39e   : > { %v932_v48 = vsel %vm829_vm2, %v929_v47, -inf }
 0x39f   : > { %933 = vmax.xlane.f32.xlu2 %v932_v48 }
 0x3b2   : > { %1034 = vrot.lane.b32.xlu1 %v2749_v15, %s2407_s12 }
 0x3b7   : > { %1062 = vrot.lane.b32.xlu2 %v2749_v15, %s2408_s15 }
 0x3ba   : > { %1232 = vrot.lane.b32.xlu1 %v2788_v53, %s2401_s8  ;;  %s2413_s8 = smov 8  }
 0x3bf   : > { %1234 = vrot.lane.b32.xlu2 %v2788_v53, %s2406_s16 }
 0x3c2   : > { %1310 = vrot.lane.b32.xlu1 %v2788_v53, %s2405_s11 }
 0x3c7   : > { %1390 = vrot.lane.b32.xlu2 %v2788_v53, %s2408_s15 }
 0x40c   : > { %v1012_v54 = vpop.xlane.xlu1 %1011 }
 0x40d   : > { %v1013_v58 = vsub.f32 %v1007_v42, %v1012_v54 }
 0x40f   : > { %v1014_v59 = vmul.f32 1.442695, %v1013_v58 }
 0x412   : > { %v934_v49 = vpop.xlane.xlu2 %933 }
 0x413   : > { %v935_v50 = vsub.f32 %v929_v47, %v934_v49 }
 0x415   : > { %v936_v51 = vmul.f32 1.442695, %v935_v50 }
 0x417   : > { %2100 = vpow2.f32 %v936_v51 }
 0x418   : > { %2102 = vpow2.f32 %v1014_v59 }
 0x41a   : > { %v1063_v2 = vpop.permute.xlu2 %1062 }
 0x41d   : > { %v2101_v55 = vpop.eup %2100 }
 0x41e   : > { %v938_v56 = vsel %vm829_vm2, %v2101_v55, 0.0  ;;  %v2103_v60 = vpop.eup %2102 }
 0x41f   : > { %939 = vadd.xlane.f32.xlu0 %v938_v56  ;;  %v1016_v61 = vsel %vm829_vm2, %v2103_v60, 0.0 }
 0x422   : > { %v1235_v11 = vpop.permute.xlu2 %1234 }
 0x424   : > { %v1035_v57 = vpop.permute.xlu1 %1034 }
 0x425   : > { %1055 = vmatpush.msrb.mxu3 %v1035_v57 }
 0x42a   : > { %v1391_v16 = vpop.permute.xlu2 %1390 }
 0x42c   : > { %v1233_v18 = vpop.permute.xlu1 %1232 }
 0x433   : > { %956 = vrot.lane.b32.xlu0 %v2749_v15, %s2409_s7 }
 0x434   : > { %v1311_v33 = vpop.permute.xlu1 %1310 }
 0x43b   : > { %1060 = vrot.lane.b32.xlu0 %v2749_v15, %s2410_s20 }
 0x443   : > { %1156 = vrot.lane.b32.xlu0 %v2788_v53, %s2402_s0  ;;  %s2414_s0 = smov 24  }
 0x44b   : > { %1312 = vrot.lane.b32.xlu0 %v2788_v53, %s2404_s29  ;;  %s3013_s29 = scalar_lea.vmem %s2968_s6, %s2692_s23  ;;  %s3017_s23 = scalar_lea.vmem [#allocation8], %s2670_s27 }
 0x475   : > { %1017 = vadd.xlane.f32.xlu0 %v1016_v61 }
 0x489   : > { %1388 = vrot.lane.b32.xlu0 %v2788_v53, %s2410_s20  ;;  %s3020_s20 = sld [smem:[#allocation30_spill]] }
 0x492   : > { %v940_v62 = vpop.xlane.xlu0 %939 }
 0x493   : > { %2104 = vrcp.f32 %v940_v62  ;;  %v952_v3 = vand.u32 2147483648, %v940_v62  ;;  %v950_v5 = vand.u32 2147483647, %v940_v62  ;;  %vm946_vm8 = vweird.f32 %v940_v62 }
 0x495   : > { %v953_v7 = vor.u32 1.1754944e-38, %v952_v3  ;;  %vm951_vm10 = vcmp.eq.f32.partialorder %v950_v5, 8.507059e+37 }
 0x499   : > { %v2105_v63 = vpop.eup %2104 }
 0x49a   : > { %v942_v0 = vmul.f32 %v2105_v63, %v940_v62  ;;  %vm947_vm7 = vweird.f32 %v2105_v63 }
 0x49b   : > { %vm948_vm9 = vmor %vm946_vm8, %vm947_vm7 }
 0x49c   : > { %v943_v1 = vsub.f32 1.0, %v942_v0 }
 0x49e   : > { %v944_v4 = vmul.f32 %v2105_v63, %v943_v1 }
 0x4a0   : > { %v945_v6 = vadd.f32 %v2105_v63, %v944_v4 }
 0x4a2   : > { %v949_v8 = vsel %vm948_vm9, %v2105_v63, %v945_v6 }
 0x4a3   : > { %v954_v9 = vsel %vm951_vm10, %v953_v7, %v949_v8 }
 0x4a4   : > { %v955_v10 = vmul.f32 %v2101_v55, %v954_v9 }
 0x4a5   : > { %v957_v13 = vpop.permute.xlu0 %956 }
 0x4a6   : > { %977 = vmatpush.msra.mxu2 %v957_v13 }
 0x4a7   : > { %1960 = vmatmul.msk.f32.vlgmr.msra.gmra.mxu2 %vm829_vm2, %v955_v10 }
 0x4a8   : > { %1964 = vmatpush.xpose.msk.msrb.mxu2 %vm829_vm2, %v1063_v2 }
 0x4ac   : > { %1970 = vmatpush.xpose.msk.msra.mxu2 %vm829_vm2, %v1235_v11 }
 0x4ad   : > { %v1061_v14 = vpop.permute.xlu0 %1060 }
 0x4af   : > { %1965 = vmatmul.msk.f32.vlgmr.msrb.gmra.mxu2 %vm829_vm2, %v1061_v14 }
 0x4b0   : > { %1976 = vmatpush.xpose.msk.msrb.mxu2 %vm829_vm2, %v1391_v16 }
 0x4b5   : > { %v1157_v17 = vpop.permute.xlu0 %1156 }
 0x4b6   : > { %1967 = vmatpush.xpose.msk.msra.mxu3 %vm829_vm2, %v1157_v17 }
 0x4b7   : > { %1971 = vmatmul.msk.f32.vlgmr.msra.gmra.mxu2 %vm829_vm2, %v1233_v18 }
 0x4bd   : > { %v1313_v19 = vpop.permute.xlu0 %1312 }
 0x4e8   : > { %v1018_v20 = vpop.xlane.xlu0 %1017 }
 0x4e9   : > { %2106 = vrcp.f32 %v1018_v20  ;;  %v1030_v24 = vand.u32 2147483648, %v1018_v20  ;;  %v1028_v26 = vand.u32 2147483647, %v1018_v20  ;;  %vm1024_vm12 = vweird.f32 %v1018_v20 }
 0x4eb   : > { %v1031_v28 = vor.u32 1.1754944e-38, %v1030_v24  ;;  %vm1029_vm14 = vcmp.eq.f32.partialorder %v1028_v26, 8.507059e+37 }
 0x4ef   : > { %v2107_v21 = vpop.eup %2106 }
 0x4f0   : > { %v1020_v22 = vmul.f32 %v2107_v21, %v1018_v20  ;;  %vm1025_vm11 = vweird.f32 %v2107_v21 }
 0x4f1   : > { %vm1026_vm13 = vmor %vm1024_vm12, %vm1025_vm11 }
 0x4f2   : > { %v1021_v23 = vsub.f32 1.0, %v1020_v22 }
 0x4f4   : > { %v1022_v25 = vmul.f32 %v2107_v21, %v1021_v23 }
 0x4f6   : > { %v1023_v27 = vadd.f32 %v2107_v21, %v1022_v25 }
 0x4f8   : > { %v1027_v29 = vsel %vm1026_vm13, %v2107_v21, %v1023_v27 }
 0x4f9   : > { %v1032_v30 = vsel %vm1029_vm14, %v1031_v28, %v1027_v29 }
 0x4fa   : > { %v1033_v31 = vmul.f32 %v2103_v60, %v1032_v30 }
 0x4fb   : > { %v1389_v32 = vpop.permute.xlu0 %1388 }
 0x4fc   : > { %1963 = vmatmul.msk.f32.vlgmr.msrb.gmra.mxu3 %vm829_vm2, %v1033_v31  ;;  %1977 = vmatmul.msk.f32.vlgmr.msrb.gmra.mxu2 %vm829_vm2, %v1389_v32 }
 0x4fd   : > { %1973 = vmatpush.xpose.msk.msrb.mxu3 %vm829_vm2, %v1313_v19 }
 0x504   : > { %1968 = vmatmul.msk.f32.vlgmr.msra.gmra.mxu3 %vm829_vm2, %v2788_v53 }
 0x50c   : > { %1974 = vmatmul.msk.f32.vlgmr.msrb.gmra.mxu3 %vm829_vm2, %v1311_v33 }
 0x52a   : > { %v2820_v34 = vpop.f32.mrf.mxu2 }
 0x532   : > { %v1085_v35 = vpop.f32.mrf.mxu2 }
 0x533   : > { %v1088_v36 = vsel %vm829_vm2, %v1085_v35, -inf }
 0x534   : > { %1089 = vmax.xlane.f32.xlu2 %v1088_v36 }
 0x53a   : > { %v1257_v37 = vpop.f32.mrf.mxu2 }
 0x53b   : > { %v1260_v38 = vsel %vm829_vm2, %v1257_v37, -inf }
 0x53c   : > { %1261 = vmax.xlane.f32.xlu0 %v1260_v38 }
 0x57f   : > { %v1057_v39 = vpop.f32.mrf.mxu3  ;;  %v1413_v43 = vpop.f32.mrf.mxu2 }
 0x580   : > { %v1416_v45 = vsel %vm829_vm2, %v1413_v43, -inf }
 0x587   : > { %v1179_v40 = vpop.f32.mrf.mxu3 }
 0x588   : > { %v1182_v42 = vsel %vm829_vm2, %v1179_v40, -inf }
 0x589   : > { %1183 = vmax.xlane.f32.xlu1 %v1182_v42 }
 0x58f   : > { %v1335_v44 = vpop.f32.mrf.mxu3 }
 0x590   : > { %v1338_v47 = vsel %vm829_vm2, %v1335_v44, -inf }
 0x591   : > { %1417 = vmax.xlane.f32.xlu1 %v1416_v45  ;;  %1339 = vmax.xlane.f32.xlu2 %v1338_v47 }
 0x5a7   : > { %v1090_v48 = vpop.xlane.xlu2 %1089 }
 0x5a8   : > { %v1091_v49 = vsub.f32 %v1085_v35, %v1090_v48 }
 0x5aa   : > { %v1092_v50 = vmul.f32 1.442695, %v1091_v49 }
 0x5ac   : > { %2108 = vpow2.f32 %v1092_v50 }
 0x5af   : > { %v1262_v51 = vpop.xlane.xlu0 %1261 }
 0x5b0   : > { %v1263_v52 = vsub.f32 %v1257_v37, %v1262_v51 }
 0x5b2   : > { %v2109_v54 = vpop.eup %2108  ;;  %v1264_v55 = vmul.f32 1.442695, %v1263_v52 }
 0x5b3   : > { %v1094_v56 = vsel %vm829_vm2, %v2109_v54, 0.0 }
 0x5b4   : > { %2110 = vpow2.f32 %v1264_v55  ;;  %1095 = vadd.xlane.f32.xlu0 %v1094_v56 }
 0x5ba   : > { %v2828_v57 = vpop.eup %2110 }
 0x5bb   : > { %v1266_v58 = vsel %vm829_vm2, %v2828_v57, 0.0 }
 0x5bc   : > { %1267 = vadd.xlane.f32.xlu1 %v1266_v58 }
 0x5c8   : > { %1206 = vrot.lane.b32.xlu0 %v2788_v53, %s2403_s18 }
 0x5d5   : > { %1112 = vrot.lane.b32.xlu1 %v2749_v15, %s2411_s26 }
 0x5dd   : > { %1440 = vrot.lane.b32.xlu1 %v2788_v53, %s2411_s26  ;;  %s1731_s26 = sshll.u32 %s3020_s20, 4  ;;  %s1732_s26 = int_to_ptr.hbm [resolvable:$true] %s1731_s26 }
 0x5fc   : > { %v1184_v59 = vpop.xlane.xlu1 %1183 }
 0x5fd   : > { %v1185_v2 = vsub.f32 %v1179_v40, %v1184_v59 }
 0x5ff   : > { %v1186_v3 = vmul.f32 1.442695, %v1185_v2 }
 0x604   : > { %v1340_v60 = vpop.xlane.xlu2 %1339  ;;  %v1418_v61 = vpop.xlane.xlu1 %1417 }
 0x605   : > { %v1341_v62 = vsub.f32 %v1335_v44, %v1340_v60  ;;  %v1419_v63 = vsub.f32 %v1413_v43, %v1418_v61 }
 0x607   : > { %v1342_v0 = vmul.f32 1.442695, %v1341_v62  ;;  %v1420_v1 = vmul.f32 1.442695, %v1419_v63 }
 0x609   : > { %2112 = vpow2.f32 %v1342_v0 }
 0x60a   : > { %2114 = vpow2.f32 %v1420_v1 }
 0x60b   : > { %2116 = vpow2.f32 %v1186_v3 }
 0x60f   : > { %v2836_v4 = vpop.eup %2112 }
 0x610   : > { %v2838_v5 = vpop.eup %2114  ;;  %v1344_v15 = vsel %vm829_vm2, %v2836_v4, 0.0 }
 0x611   : > { %1345 = vadd.xlane.f32.xlu0 %v1344_v15  ;;  %v1422_v6 = vsel %vm829_vm2, %v2838_v5, 0.0  ;;  %v2844_v7 = vpop.eup %2116 }
 0x612   : > { %1423 = vadd.xlane.f32.xlu2 %v1422_v6  ;;  %v1188_v8 = vsel %vm829_vm2, %v2844_v7, 0.0 }
 0x61a   : > { %1189 = vadd.xlane.f32.xlu2 %v1188_v8 }
 0x625   : > { %1362 = vrot.lane.b32.xlu0 %v2788_v53, %s2407_s12 }
 0x627   : > { %v1096_v9 = vpop.xlane.xlu0 %1095 }
 0x628   : > { %2118 = vrcp.f32 %v1096_v9  ;;  %v1108_v18 = vand.u32 2147483648, %v1096_v9  ;;  %vm1102_vm0 = vweird.f32 %v1096_v9  ;;  %v1106_v19 = vand.u32 2147483647, %v1096_v9 }
 0x62a   : > { %v1109_v22 = vor.u32 1.1754944e-38, %v1108_v18  ;;  %vm1107_vm4 = vcmp.eq.f32.partialorder %v1106_v19, 8.507059e+37  ;;  %v1484_v19 = vld [vmem:[%s2705_s22 + $0x18] sm:$0xff] }
 0x62b   : > { %1507 = vmatpush.msra.mxu3 %v1484_v19 }
 0x62d   : > { %1143 = vrot.lane.b32.xlu0 %v1057_v39, %s2412_s2 }
 0x62e   : > { %v2119_v10 = vpop.eup %2118 }
 0x62f   : > { %v1098_v11 = vmul.f32 %v2119_v10, %v1096_v9  ;;  %vm1103_vm15 = vweird.f32 %v2119_v10  ;;  %v1268_v20 = vpop.xlane.xlu1 %1267 }
 0x630   : > { %vm1104_vm3 = vmor %vm1102_vm0, %vm1103_vm15  ;;  %2120 = vrcp.f32 %v1268_v20  ;;  %v1280_v33 = vand.u32 2147483648, %v1268_v20  ;;  %vm1274_vm6 = vweird.f32 %v1268_v20 }
 0x631   : > { %v1099_v13 = vsub.f32 1.0, %v1098_v11 }
 0x632   : > { %1284 = vrot.lane.b32.xlu2 %v2788_v53, %s2409_s7  ;;  %v1281_v40 = vor.u32 1.1754944e-38, %v1280_v33 }
 0x633   : > { %v1100_v14 = vmul.f32 %v2119_v10, %v1099_v13 }
 0x635   : > { %v1101_v17 = vadd.f32 %v2119_v10, %v1100_v14 }
 0x636   : > { %v2121_v25 = vpop.eup %2120 }
 0x637   : > { %v1105_v21 = vsel %vm1104_vm3, %v2119_v10, %v1101_v17  ;;  %v1270_v26 = vmul.f32 %v2121_v25, %v1268_v20  ;;  %vm1275_vm5 = vweird.f32 %v2121_v25 }
 0x638   : > { %v1110_v23 = vsel %vm1107_vm4, %v1109_v22, %v1105_v21  ;;  %vm1276_vm7 = vmor %vm1274_vm6, %vm1275_vm5  ;;  %v1482_v21 = vld [vmem:[%s2705_s22 + $0x8] sm:$0xff]  ;;  %v1481_v22 = vld [vmem:[%s2705_s22] sm:$0xff] }
 0x639   : > { %v1111_v24 = vmul.f32 %v2109_v54, %v1110_v23  ;;  %v1271_v27 = vsub.f32 1.0, %v1270_v26 }
 0x63a   : > { %1139 = vrot.lane.b32.xlu2 %v2820_v34, %s2413_s8  ;;  %v1207_v16 = vpop.permute.xlu0 %1206  ;;  %v1278_v34 = vand.u32 2147483647, %v1268_v20  ;;  %v1483_v20 = vld [vmem:[%s2705_s22 + $0x10] sm:$0xff] }
 0x63b   : > { %1227 = vmatpush.msrb.mxu0 %v1207_v16  ;;  %v1272_v30 = vmul.f32 %v2121_v25, %v1271_v27  ;;  %1508 = vmatpush.msra.mxu3 %v1483_v20  ;;  %v1629_v20 = vld [vmem:[%s2724_s28 + $0x38] sm:$0xff] }
 0x63c   : > { %vm1279_vm8 = vcmp.eq.f32.partialorder %v1278_v34, 8.507059e+37  ;;  %1649 = vmatpush.msra.mxu2 %v1629_v20 }
 0x63d   : > { %v1273_v31 = vadd.f32 %v2121_v25, %v1272_v30  ;;  %1509 = vmatpush.msra.mxu3 %v1482_v21  ;;  %v1628_v21 = vld [vmem:[%s2724_s28 + $0x30] sm:$0xff] }
 0x63e   : > { %1650 = vmatpush.msra.mxu2 %v1628_v21 }
 0x63f   : > { %v1277_v38 = vsel %vm1276_vm7, %v2121_v25, %v1273_v31  ;;  %1510 = vmatpush.msra.mxu3 %v1481_v22  ;;  %vm1151_vm7 = vcmask 130048  }
 0x640   : > { %v1282_v44 = vsel %vm1279_vm8, %v1281_v40, %v1277_v38  ;;  %vm1153_vm8 = vcmask 195584   ;;  %v2415_v40 = vmov 32.0  }
 0x641   : > { %v1283_v54 = vmul.f32 %v2828_v57, %v1282_v44 }
 0x647   : > { %v1113_v53 = vpop.permute.xlu1 %1112 }
 0x648   : > { %1133 = vmatpush.msrb.mxu1 %v1113_v53 }
 0x649   : > { %1966 = vmatmul.msk.f32.vlgmr.msrb.gmra.mxu1 %vm829_vm2, %v1111_v24 }
 0x64f   : > { %v1441_v56 = vpop.permute.xlu1 %1440 }
 0x684   : > { %v2856_v28 = vpop.xlane.xlu0 %1345 }
 0x685   : > { %v1424_v29 = vpop.xlane.xlu2 %1423  ;;  %v1358_v9 = vand.u32 2147483648, %v2856_v28  ;;  %vm1352_vm4 = vweird.f32 %v2856_v28  ;;  %v1356_v11 = vand.u32 2147483647, %v2856_v28 }
 0x686   : > { %2122 = vrcp.f32 %v1424_v29  ;;  %v1434_v48 = vand.u32 2147483647, %v1424_v29  ;;  %v1436_v49 = vand.u32 2147483648, %v1424_v29  ;;  %vm1430_vm10 = vweird.f32 %v1424_v29 }
 0x687   : > { %2124 = vrcp.f32 %v2856_v28  ;;  %vm1357_vm6 = vcmp.eq.f32.partialorder %v1356_v11, 8.507059e+37 }
 0x688   : > { %vm1435_vm12 = vcmp.eq.f32.partialorder %v1434_v48, 8.507059e+37  ;;  %v1437_v61 = vor.u32 1.1754944e-38, %v1436_v49 }
 0x68c   : > { %v2123_v32 = vpop.eup %2122 }
 0x68d   : > { %v1426_v35 = vmul.f32 %v2123_v32, %v1424_v29  ;;  %v1190_v36 = vpop.xlane.xlu2 %1189  ;;  %v2125_v37 = vpop.eup %2124  ;;  %vm1431_vm9 = vweird.f32 %v2123_v32 }
 0x68e   : > { %2126 = vrcp.f32 %v1190_v36  ;;  %v1348_v42 = vmul.f32 %v2125_v37, %v2856_v28  ;;  %vm2861_vm11 = vmor %vm1430_vm10, %vm1431_vm9  ;;  %v1202_v62 = vand.u32 2147483648, %v1190_v36  ;;  %v1200_v0 = vand.u32 2147483647, %v1190_v36 }
 0x68f   : > { %v1427_v39 = vsub.f32 1.0, %v1426_v35  ;;  %vm1196_vm14 = vweird.f32 %v1190_v36  ;;  %vm1353_vm15 = vweird.f32 %v2125_v37  ;;  %2128 = vrcp.f32 %v2415_v40 }
 0x690   : > { %v1349_v50 = vsub.f32 1.0, %v1348_v42  ;;  %v1203_v3 = vor.u32 1.1754944e-38, %v1202_v62  ;;  %vm1201_vm3 = vcmp.eq.f32.partialorder %v1200_v0, 8.507059e+37  ;;  %vm1354_vm5 = vmor %vm1352_vm4, %vm1353_vm15  ;;  %v1584_v0 = vld [vmem:[%s2718_s24 + $0x8] sm:$0xff]  ;;  %vm1634_vm15 = vcmask 523264  }
 0x691   : > { %v1428_v43 = vmul.f32 %v2123_v32, %v1427_v39 }
 0x692   : > { %v1350_v63 = vmul.f32 %v2125_v37, %v1349_v50 }
 0x693   : > { %v1429_v45 = vadd.f32 %v2123_v32, %v1428_v43 }
 0x694   : > { %v2127_v47 = vpop.eup %2126  ;;  %v1351_v15 = vadd.f32 %v2125_v37, %v1350_v63  ;;  %v1586_v63 = vld [vmem:[%s2718_s24 + $0x18] sm:$0xff] }
 0x695   : > { %v1192_v51 = vmul.f32 %v2127_v47, %v1190_v36  ;;  %v1285_v52 = vpop.permute.xlu2 %1284  ;;  %v1433_v58 = vsel %vm2861_vm11, %v2123_v32, %v1429_v45  ;;  %vm1197_vm13 = vweird.f32 %v2127_v47  ;;  %v2089_v36 = vld [vmem:[%s3013_s29] ss:$0 sm:$0xff]  ;;  %v2129_v44 = vpop.eup %2128 }
 0x696   : > { %1305 = vmatpush.msra.mxu1 %v1285_v52  ;;  %v1438_v1 = vsel %vm1435_vm12, %v1437_v61, %v1433_v58  ;;  %vm1198_vm0 = vmor %vm1196_vm14, %vm1197_vm13  ;;  %v1355_v14 = vsel %vm1354_vm5, %v2125_v37, %v1351_v15  ;;  %v1529_v48 = vmul.f32 32.0, %v2129_v44 }
 0x697   : > { %v1193_v59 = vsub.f32 1.0, %v1192_v51  ;;  %1972 = vmatmul.msk.f32.vlgmr.msra.gmra.mxu1 %vm829_vm2, %v1283_v54  ;;  %v1363_v60 = vpop.permute.xlu0 %1362  ;;  %v1439_v6 = vmul.f32 %v2838_v5, %v1438_v1  ;;  %v1359_v5 = vor.u32 1.1754944e-38, %v1358_v9  ;;  %v1583_v1 = vld [vmem:[%s2718_s24] sm:$0xff] }
 0x698   : > { %1461 = vmatpush.msrb.mxu1 %v1441_v56  ;;  %1383 = vmatpush.msra.mxu0 %v1363_v60  ;;  %v1530_v49 = vsub.f32 1.0, %v1529_v48 }
 0x699   : > { %v1194_v57 = vmul.f32 %v2127_v47, %v1193_v59  ;;  %v1360_v16 = vsel %vm1357_vm6, %v1359_v5, %v1355_v14  ;;  %v2090_v14 = vld [vmem:[%s758_s30] ss:$0 sm:$0xff]  ;;  %s3016_s30 = scalar_lea.vmem [#allocation7], %s2670_s27 }
 0x69a   : > { %v1361_v17 = vmul.f32 %v2836_v4, %v1360_v16  ;;  %v1531_v50 = vmul.f32 %v2129_v44, %v1530_v49 }
 0x69b   : > { %v1195_v2 = vadd.f32 %v2127_v47, %v1194_v57  ;;  %v1585_v57 = vld [vmem:[%s2718_s24 + $0x10] sm:$0xff] }
 0x69c   : > { %v1532_v51 = vadd.f32 %v2129_v44, %v1531_v50 }
 0x69d   : > { %v1199_v8 = vsel %vm1198_vm0, %v2127_v47, %v1195_v2  ;;  %v1140_v24 = vpop.permute.xlu2 %1139 }
 0x69e   : > { %v1204_v10 = vsel %vm1201_vm3, %v1203_v3, %v1199_v8  ;;  %v1150_v26 = vsel %vm829_vm2, %v2773_v41, %v1140_v24  ;;  %v1625_v24 = vld [vmem:[%s2724_s28 + $0x18] sm:$0xff] }
 0x69f   : > { %1978 = vmatmul.msk.f32.vlgmr.msrb.gmra.mxu1 %vm829_vm2, %v1439_v6  ;;  %v1205_v13 = vmul.f32 %v2844_v7, %v1204_v10  ;;  %v1144_v25 = vpop.permute.xlu0 %1143 }
 0x6a0   : > { %v1152_v27 = vsel %vm1151_vm7, %v1150_v26, %v1144_v25 }
 0x6a1   : > { %1969 = vmatmul.msk.f32.vlgmr.msrb.gmra.mxu0 %vm829_vm2, %v1205_v13 }
 0x6a2   : > { %1609 = vmatpush.msrb.mxu0 %v1586_v63 }
 0x6a4   : > { %1610 = vmatpush.msrb.mxu0 %v1585_v57 }
 0x6a6   : > { %1611 = vmatpush.msrb.mxu0 %v1584_v0 }
 0x6a8   : > { %1612 = vmatpush.msrb.mxu0 %v1583_v1 }
 0x6a9   : > { %1975 = vmatmul.msk.f32.vlgmr.msra.gmra.mxu0 %vm829_vm2, %v1361_v17  ;;  %v2091_v17 = vld [vmem:[%s3015_s21] ss:$0 sm:$0xff] }
 0x6c6   : > { %v1135_v18 = vpop.f32.mrf.mxu1 }
 0x6c7   : > { %1147 = vrot.lane.b32.xlu1 %v1135_v18, %s2414_s0 }
 0x714   : > { %v1307_v7 = vpop.f32.mrf.mxu1 }
 0x715   : > { %1467 = vrot.lane.b32.xlu2 %v1307_v7, %s2413_s8  ;;  %v1627_v7 = vld [vmem:[%s2724_s28 + $0x28] sm:$0xff] }
 0x716   : > { %1651 = vmatpush.msra.mxu2 %v1627_v7 }
 0x71c   : > { %v1463_v23 = vpop.f32.mrf.mxu1 }
 0x71d   : > { %1475 = vrot.lane.b32.xlu1 %v1463_v23, %s2414_s0 }
 0x71e   : > { %v1229_v53 = vpop.f32.mrf.mxu0 }
 0x726   : > { %v1385_v4 = vpop.f32.mrf.mxu0 }
 0x727   : > { %1471 = vrot.lane.b32.xlu0 %v1385_v4, %s2412_s2  ;;  %s2417_s2 = smov 128  }
 0x739   : > { %v1148_v28 = vpop.permute.xlu1 %1147 }
 0x73a   : > { %v1154_v29 = vsel %vm1153_vm8, %v1152_v27, %v1148_v28 }
 0x73b   : > { %1979 = vmatmul.msk.f32.vlgmr.msra.gmra.mxu3 %vm796_vm1, %v1154_v29 }
 0x76f   : > { %v1468_v30 = vpop.permute.xlu2 %1467 }
 0x770   : > { %v1478_v31 = vsel %vm829_vm2, %v1229_v53, %v1468_v30  ;;  %vm1533_vm2 = vweird.f32 %v2129_v44  ;;  %v1626_v53 = vld [vmem:[%s2724_s28 + $0x20] sm:$0xff] }
 0x771   : > { %1652 = vmatpush.msra.mxu2 %v1626_v53 }
 0x773   : > { %1653 = vmatpush.msra.mxu2 %v1625_v24 }
 0x78f   : > { %v1476_v33 = vpop.permute.xlu1 %1475 }
 0x799   : > { %v1472_v32 = vpop.permute.xlu0 %1471 }
 0x79a   : > { %v1479_v34 = vsel %vm1151_vm7, %v1478_v31, %v1472_v32 }
 0x79b   : > { %v1480_v35 = vsel %vm1153_vm8, %v1479_v34, %v1476_v33  ;;  %v1624_v34 = vld [vmem:[%s2724_s28 + $0x10] sm:$0xff] }
 0x79c   : > { %1980 = vmatmul.msk.f32.gmra.mxu3 %vm796_vm1, %v1480_v35  ;;  %1654 = vmatpush.msra.mxu2 %v1624_v34 }
 0x7be   : > { %v1512_v41 = vpop.f32.mrf.mxu3 }
 0x7bf   : > { %v1513_v37 = vadd.f32 %v2089_v36, %v1512_v41  ;;  %v1622_v41 = vld [vmem:[%s2724_s28] sm:$0xff] }
 0x7c1   : > { %v1518_v38 = vadd.f32 %v1513_v37, %v2737_v12  ;;  %v2897_v12 = vsel %vm1533_vm2, %v2129_v44, %v1532_v51  ;;  %v2092_v37 = vld [vmem:[%s3016_s30] ss:$0 sm:$0xff] }
 0x7c3   : > { %v1522_v39 = vsel %vm796_vm1, %v1518_v38, 0.0 }
 0x7c4   : > { %1523 = vadd.xlane.f32.xlu2 %v1522_v39 }
 0x81f   : > { %v1515_v42 = vpop.f32.mrf.mxu3 }
 0x820   : > { %v1516_v43 = vadd.f32 %v2089_v36, %v1515_v42  ;;  %v1623_v36 = vld [vmem:[%s2724_s28 + $0x8] sm:$0xff]  ;;  %s3018_s28 = scalar_lea.vmem [#allocation10], %s2670_s27  ;;  %s2416_s27 = smov [#allocation13]  }
 0x821   : > { %1655 = vmatpush.msra.mxu2 %v1623_v36  ;;  %s1729_s12 = sshll.u32 %s2416_s27, 4  ;;  %s1730_s12 = int_to_ptr.vmem [resolvable:$true] %s1729_s12 }
 0x822   : > { %v1519_v45 = vadd.f32 %v1516_v43, %v2779_v46 }
 0x823   : > { %1656 = vmatpush.msra.mxu2 %v1622_v41 }
 0x824   : > { %v1525_v47 = vsel %vm796_vm1, %v1519_v45, 0.0 }
 0x825   : > { %1526 = vadd.xlane.f32.xlu0 %v1525_v47 }
 0x837   : > { %v1524_v52 = vpop.xlane.xlu2 %1523 }
 0x838   : > { %v1535_v54 = vmul.f32 %v2897_v12, %v1524_v52 }
 0x83a   : > { %v1537_v55 = vsub.f32 %v1518_v38, %v1535_v54 }
 0x83c   : > { %v1539_v56 = vmul.f32 %v1537_v55, %v1537_v55 }
 0x83e   : > { %v1541_v46 = vsel %vm796_vm1, %v1539_v56, 0.0 }
 0x83f   : > { %1542 = vadd.xlane.f32.xlu1 %v1541_v46 }
 0x898   : > { %v1527_v58 = vpop.xlane.xlu0 %1526 }
 0x899   : > { %v1536_v59 = vmul.f32 %v2897_v12, %v1527_v58 }
 0x89b   : > { %v1538_v60 = vsub.f32 %v1519_v45, %v1536_v59  ;;  %v2093_v45 = vld [vmem:[%s3017_s23] ss:$0 sm:$0xff] }
 0x89d   : > { %v1540_v61 = vmul.f32 %v1538_v60, %v1538_v60 }
 0x89f   : > { %v1544_v62 = vsel %vm796_vm1, %v1540_v61, 0.0 }
 0x8a0   : > { %1545 = vadd.xlane.f32.xlu2 %v1544_v62 }
 0x8b2   : > { %v1543_v2 = vpop.xlane.xlu1 %1542 }
 0x8b3   : > { %v1547_v3 = vmul.f32 %v1543_v2, %v2897_v12 }
 0x8b5   : > { %v1549_v15 = vadd.f32 1e-05, %v1547_v3 }
 0x8b7   : > { %2130 = vrsqrt.f32 %v1549_v15  ;;  %vm1557_vm10 = vweird.f32 %v1549_v15 }
 0x8bd   : > { %v2131_v6 = vpop.eup %2130 }
 0x8be   : > { %v1552_v8 = vmul.f32 %v2131_v6, %v1549_v15  ;;  %vm1558_vm9 = vweird.f32 %v2131_v6 }
 0x8bf   : > { %vm1559_vm11 = vmor %vm1557_vm10, %vm1558_vm9 }
 0x8c0   : > { %v1553_v9 = vmul.f32 %v2131_v6, %v1552_v8 }
 0x8c2   : > { %v1554_v10 = vmul.f32 0.5, %v1553_v9 }
 0x8c4   : > { %v1555_v11 = vsub.f32 1.5, %v1554_v10 }
 0x8c6   : > { %v1556_v13 = vmul.f32 %v2131_v6, %v1555_v11 }
 0x8c8   : > { %v1560_v5 = vsel %vm1559_vm11, %v2131_v6, %v1556_v13  ;;  %v2094_v13 = vld [vmem:[%s3018_s28] ss:$0 sm:$0xff] }
 0x8c9   : > { %v1571_v16 = vmul.f32 %v1560_v5, %v1537_v55  ;;  %v2095_v5 = vld [vmem:[%s3019_s25] ss:$0 sm:$0xff] }
 0x8cb   : > { %v1576_v18 = vmul.f32 %v2090_v14, %v1571_v16 }
 0x8cd   : > { %v1581_v19 = vadd.f32 %v2091_v17, %v1576_v18 }
 0x8cf   : > { %1981 = vmatmul.msk.f32.vlgmr.msrb.gmra.mxu0 %vm796_vm1, %v1581_v19 }
 0x913   : > { %v1546_v22 = vpop.xlane.xlu2 %1545 }
 0x914   : > { %v1548_v23 = vmul.f32 %v1546_v22, %v2897_v12 }
 0x916   : > { %v1550_v4 = vadd.f32 1e-05, %v1548_v23 }
 0x918   : > { %2132 = vrsqrt.f32 %v1550_v4  ;;  %vm1567_vm13 = vweird.f32 %v1550_v4 }
 0x91e   : > { %v2133_v25 = vpop.eup %2132 }
 0x91f   : > { %v1562_v26 = vmul.f32 %v2133_v25, %v1550_v4  ;;  %vm1568_vm12 = vweird.f32 %v2133_v25 }
 0x920   : > { %vm1569_vm14 = vmor %vm1567_vm13, %vm1568_vm12 }
 0x921   : > { %v1563_v27 = vmul.f32 %v2133_v25, %v1562_v26 }
 0x923   : > { %v1564_v28 = vmul.f32 0.5, %v1563_v27 }
 0x925   : > { %v1565_v29 = vsub.f32 1.5, %v1564_v28 }
 0x927   : > { %v1566_v30 = vmul.f32 %v2133_v25, %v1565_v29 }
 0x929   : > { %v1570_v31 = vsel %vm1569_vm14, %v2133_v25, %v1566_v30 }
 0x92a   : > { %v1572_v32 = vmul.f32 %v1570_v31, %v1538_v60 }
 0x92c   : > { %v1577_v33 = vmul.f32 %v2090_v14, %v1572_v32 }
 0x92e   : > { %v1582_v35 = vadd.f32 %v2091_v17, %v1577_v33 }
 0x930   : > { %1982 = vmatmul.msk.f32.gmra.mxu0 %vm796_vm1, %v1582_v35 }
 0x94c   : > { %v1614_v38 = vpop.f32.mrf.mxu0 }
 0x94d   : > { %v1615_v39 = vadd.f32 %v2092_v37, %v1614_v38 }
 0x94f   : > { %v1620_v40 = vmax.f32 %v1615_v39, 0.0 }
 0x951   : > { %1983 = vmatmul.msk.f32.vlgmr.msra.gmra.mxu2 %vm1634_vm15, %v1620_v40 }
 0x9ad   : > { %v1617_v42 = vpop.f32.mrf.mxu0 }
 0x9ae   : > { %v1618_v43 = vadd.f32 %v2092_v37, %v1617_v42 }
 0x9b0   : > { %v1621_v44 = vmax.f32 %v1618_v43, 0.0 }
 0x9b2   : > { %1984 = vmatmul.msk.f32.gmra.mxu2 %vm1634_vm15, %v1621_v44 }
 0x9d4   : > { %v1658_v47 = vpop.f32.mrf.mxu2 }
 0x9d5   : > { %v1659_v48 = vadd.f32 %v2093_v45, %v1658_v47 }
 0x9d7   : > { %v1664_v49 = vadd.f32 %v1659_v48, %v1581_v19 }
 0x9d9   : > { %v1668_v50 = vsel %vm796_vm1, %v1664_v49, 0.0 }
 0x9da   : > { %1669 = vadd.xlane.f32.xlu0 %v1668_v50 }
 0xa35   : > { %v1661_v51 = vpop.f32.mrf.mxu2 }
 0xa36   : > { %v1662_v52 = vadd.f32 %v2093_v45, %v1661_v51 }
 0xa38   : > { %v1665_v54 = vadd.f32 %v1662_v52, %v1582_v35 }
 0xa3a   : > { %v1671_v55 = vsel %vm796_vm1, %v1665_v54, 0.0 }
 0xa3b   : > { %1672 = vadd.xlane.f32.xlu1 %v1671_v55 }
 0xa4d   : > { %v1670_v56 = vpop.xlane.xlu0 %1669 }
 0xa4e   : > { %v1674_v46 = vmul.f32 %v1670_v56, %v2897_v12 }
 0xa50   : > { %v1676_v58 = vsub.f32 %v1664_v49, %v1674_v46 }
 0xa52   : > { %v1678_v59 = vmul.f32 %v1676_v58, %v1676_v58 }
 0xa54   : > { %v1680_v60 = vsel %vm796_vm1, %v1678_v59, 0.0 }
 0xa55   : > { %1681 = vadd.xlane.f32.xlu2 %v1680_v60 }
 0xaae   : > { %v1673_v61 = vpop.xlane.xlu1 %1672 }
 0xaaf   : > { %v1675_v62 = vmul.f32 %v1673_v61, %v2897_v12 }
 0xab1   : > { %v1677_v63 = vsub.f32 %v1665_v54, %v1675_v62 }
 0xab3   : > { %v1679_v57 = vmul.f32 %v1677_v63, %v1677_v63 }
 0xab5   : > { %v1683_v0 = vsel %vm796_vm1, %v1679_v57, 0.0 }
 0xab6   : > { %1684 = vadd.xlane.f32.xlu0 %v1683_v0 }
 0xac8   : > { %v1682_v1 = vpop.xlane.xlu2 %1681 }
 0xac9   : > { %v1686_v2 = vmul.f32 %v1682_v1, %v2897_v12 }
 0xacb   : > { %v1688_v3 = vadd.f32 1e-05, %v1686_v2 }
 0xacd   : > { %2134 = vrsqrt.f32 %v1688_v3  ;;  %vm1696_vm3 = vweird.f32 %v1688_v3 }
 0xad3   : > { %v2135_v15 = vpop.eup %2134 }
 0xad4   : > { %v1691_v6 = vmul.f32 %v2135_v15, %v1688_v3  ;;  %vm1697_vm0 = vweird.f32 %v2135_v15 }
 0xad5   : > { %vm1698_vm4 = vmor %vm1696_vm3, %vm1697_vm0 }
 0xad6   : > { %v1692_v8 = vmul.f32 %v2135_v15, %v1691_v6 }
 0xad8   : > { %v1693_v9 = vmul.f32 0.5, %v1692_v8 }
 0xada   : > { %v1694_v10 = vsub.f32 1.5, %v1693_v9 }
 0xadc   : > { %v1695_v11 = vmul.f32 %v2135_v15, %v1694_v10 }
 0xade   : > { %v1699_v14 = vsel %vm1698_vm4, %v2135_v15, %v1695_v11 }
 0xadf   : > { %v1710_v16 = vmul.f32 %v1699_v14, %v1676_v58 }
 0xae1   : > { %v1715_v17 = vmul.f32 %v2094_v13, %v1710_v16 }
 0xae3   : > { %v1720_v18 = vadd.f32 %v2095_v5, %v1715_v17 }
 0xae5   : > { %1722 = vst.msk [vmem:[#allocation13] sm:$0xff] %vm796_vm1, %v1720_v18 }
 0xb29   : > { %v1685_v19 = vpop.xlane.xlu0 %1684 }
 0xb2a   : > { %v1687_v20 = vmul.f32 %v1685_v19, %v2897_v12 }
 0xb2c   : > { %v1689_v21 = vadd.f32 1e-05, %v1687_v20 }
 0xb2e   : > { %2136 = vrsqrt.f32 %v1689_v21  ;;  %vm1706_vm6 = vweird.f32 %v1689_v21 }
 0xb34   : > { %v2137_v7 = vpop.eup %2136 }
 0xb35   : > { %v1701_v22 = vmul.f32 %v2137_v7, %v1689_v21  ;;  %vm1707_vm5 = vweird.f32 %v2137_v7 }
 0xb36   : > { %vm1708_vm7 = vmor %vm1706_vm6, %vm1707_vm5 }
 0xb37   : > { %v1702_v23 = vmul.f32 %v2137_v7, %v1701_v22 }
 0xb39   : > { %v1703_v53 = vmul.f32 0.5, %v1702_v23 }
 0xb3b   : > { %v1704_v4 = vsub.f32 1.5, %v1703_v53 }
 0xb3d   : > { %v1705_v24 = vmul.f32 %v2137_v7, %v1704_v4 }
 0xb3f   : > { %v1709_v25 = vsel %vm1708_vm7, %v2137_v7, %v1705_v24 }
 0xb40   : > { %v1711_v26 = vmul.f32 %v1709_v25, %v1677_v63 }
 0xb42   : > { %v1716_v12 = vmul.f32 %v2094_v13, %v1711_v26 }
 0xb44   : > { %v1721_v27 = vadd.f32 %v2095_v5, %v1716_v12 }
 0xb46   : > { %1723 = vst.msk [vmem:[#allocation13 + $0x8] sm:$0xff] %vm796_vm1, %v1721_v27 }
 0xb47   : > { %2008 = dma.vmem_to_hbm [thread:$0]  (%p2034_p7), %s1730_s12, 256, %s1732_s26, [#allocation4], %s2417_s2, %s2417_s2, %s2413_s8  }
 0xb48   : > { %2379 = dma.done.wait (%p2034_p7), [#allocation4], 256  }
 0xb49   : > { %2381 = vsyncadd (%p2034_p7), [#allocation4], 4294967040 }
 0xb4a PF: > { %s3021_s21 = sld [smem:[#allocation20_spill]]  ;;  %s3024_s18 = smov %s2388_s19 }
 0xb4b   : > { %s3022_s0 = sld [smem:[#allocation19_spill]] }
 0xb4c   : > { %s3023_s20 = sld [smem:[#allocation21_spill]] }
 0xb50   : > { %p33_p10 = scmp.ge.s32.totalorder %s3021_s21, 4  }
 0xb51   : > { %s3025_s19 = smov %s3022_s0 }
 0xb52   :  { %35 = sbr.rel (!%p33_p10) target bundleno = 19 (0x13), region = 195 }
 0xb57   :  { %1748 = vsyncpa [#allocation3], 1 }
 0xb58   :  { %1750 = vsyncpa [#allocation3 + $0x1], 1 }
 0xb59   :  { %1751 = vsyncpa [#allocation6], 1 }
 0xb5a   :  { %1753 = vsyncpa [#allocation6 + $0x1], 1 }
 0xb5b   :  { %1754 = vsyncpa [#allocation9], 1 }
 0xb5c   :  { %1756 = vsyncpa [#allocation9 + $0x1], 1 }
 0xb5d   :  { %1757 = vsyncpa [#allocation12], 1 }
 0xb5e   :  { %1759 = vsyncpa [#allocation12 + $0x1], 1 }
 0xb5f   :  { %1760 = vsyncpa [#allocation4], 1 }
 0xb60   :  { %1762 = vsyncpa [#allocation4 + $0x1], 1 }

</bundles_post_ra>
